<compile_context>
chip_gen: v7x
topology: tpu7x:2x2x1
jax: 0.10.0
libtpu: 0.0.40
codegen_flags: <defaults>
</compile_context>

<pallas_src>
import functools

import jax
import jax.numpy as jnp
from jax import lax
from jax.experimental import pallas as pl
from jax.experimental.pallas import tpu as pltpu


def _attention_kernel(xfull_ref, xq_ref, wq_ref, wk_ref, wv_ref, wproj_ref,
                      bproj_ref, out_ref, attn_ref, k_scratch, v_scratch,
                      *, num_heads):
    """One (batch, query-tile) grid step.

    xfull_ref : (1, N, C)      full sequence for this batch element (K/V source)
    xq_ref    : (1, TQ, C)     query-tile rows
    wq_ref    : (C, C)  bf16   q projection weight (softmax scale pre-folded)
    wk_ref    : (C, C)  bf16   k projection weight
    wv_ref    : (C, C)  bf16   v projection weight
    wproj_ref : (C, C)  bf16   output projection weight
    bproj_ref : (1, C)  f32    output projection bias
    out_ref   : (1, TQ, C)     output tile
    attn_ref  : (1, H, TQ, N)  attention probabilities (f32)
    k_scratch : (N, C)  bf16   persistent K projection (per batch element)
    v_scratch : (N, C)  bf16   persistent V projection (per batch element)
    """
    qi = pl.program_id(1)
    H = num_heads
    N, C = k_scratch.shape
    tq = xq_ref.shape[1]
    hd = C // H

    # ---- K / V projection: once per batch element, reused by all query tiles
    # through persistent VMEM scratch (tile axis is "arbitrary" => sequential).
    @pl.when(qi == 0)
    def _():
        x_full = xfull_ref[0].astype(jnp.bfloat16)                     # (N, C)
        k_scratch[...] = jnp.dot(
            x_full, wk_ref[...],
            preferred_element_type=jnp.float32).astype(jnp.bfloat16)
        v_scratch[...] = jnp.dot(
            x_full, wv_ref[...],
            preferred_element_type=jnp.float32).astype(jnp.bfloat16)

    # ---- Q projection for this query tile (scale already folded into wq). ---
    xq = xq_ref[0].astype(jnp.bfloat16)                                # (TQ, C)
    q = jnp.dot(xq, wq_ref[...],
                preferred_element_type=jnp.float32).astype(jnp.bfloat16)

    k = k_scratch[...]                                                 # (N, C)
    v = v_scratch[...]                                                 # (N, C)

    # ---- Per-head attention with plain 2-D MXU dots. -----------------------
    y = jnp.zeros((tq, C), dtype=jnp.float32)
    for h in range(H):                      # static unroll over heads
        lo, hi = h * hd, (h + 1) * hd
        q_h = q[:, lo:hi]                                              # (TQ, hd)
        k_h = k[:, lo:hi]                                              # (N,  hd)
        v_h = v[:, lo:hi]                                              # (N,  hd)

        # scores = q_h @ k_h^T : contract head_dim directly, f32 accumulation.
        s = lax.dot_general(q_h, k_h, (((1,), (1,)), ((), ())),
                            preferred_element_type=jnp.float32)        # (TQ, N)

        # Numerically stable softmax (f32 elementwise); reciprocal on the EUP.
        m = jnp.max(s, axis=-1, keepdims=True)
        e = jnp.exp(s - m)
        p = e * pl.reciprocal(jnp.sum(e, axis=-1, keepdims=True), approx=True)

        attn_ref[0, h] = p.astype(attn_ref.dtype)                      # (TQ, N)

        ctx_h = jnp.dot(p.astype(jnp.bfloat16), v_h,
                        preferred_element_type=jnp.float32)            # (TQ, hd)
        # Fold the output projection into the head loop: y += ctx_h @ Wp[rows].
        y = y + jnp.dot(ctx_h.astype(jnp.bfloat16), wproj_ref[lo:hi, :],
                        preferred_element_type=jnp.float32)            # (TQ, C)

    out_ref[0] = (y + bproj_ref[...]).astype(out_ref.dtype)


def _pick_query_tile(n):
    """Largest of {256, 128} dividing n, else a single full-sequence tile."""
    for t in (256, 128):
        if n % t == 0:
            return t
    return n


def attention_forward(x, w_qkv, w_proj, b_proj, num_heads):
    """Pallas TPU forward of DINO ViT `Attention`.

    x: (B, N, C); w_qkv: (C, 3C) (input-major, i.e. PyTorch weight.T);
    w_proj: (C, C) (input-major); b_proj: (C,).
    Returns (out (B, N, C) in x.dtype, attn (B, H, N, N) f32).
    """
    B, N, C = x.shape
    H = num_heads
    hd = C // H
    scale = hd ** (-0.5)

    # Split the qkv weight, fold the softmax scale into the q slice (zero
    # kernel cost), and ship MXU weight operands as bf16 (f32 accumulation
    # happens inside the kernel).
    w_q = (w_qkv[:, 0 * C:1 * C] * scale).astype(jnp.bfloat16)
    w_k = w_qkv[:, 1 * C:2 * C].astype(jnp.bfloat16)
    w_v = w_qkv[:, 2 * C:3 * C].astype(jnp.bfloat16)
    w_p = w_proj.astype(jnp.bfloat16)
    b_p = b_proj.reshape(1, C).astype(jnp.float32)

    tq = _pick_query_tile(N)
    nq = N // tq

    kernel = functools.partial(_attention_kernel, num_heads=H)

    out_shapes = (
        jax.ShapeDtypeStruct((B, N, C), x.dtype),          # projected output
        jax.ShapeDtypeStruct((B, H, N, N), jnp.float32),   # attention weights
    )

    const = lambda b, qi: (0, 0)

    return pl.pallas_call(
        kernel,
        out_shape=out_shapes,
        grid_spec=pltpu.PrefetchScalarGridSpec(
            num_scalar_prefetch=0,
            grid=(B, nq),
            in_specs=[
                pl.BlockSpec((1, N, C), lambda b, qi: (b, 0, 0)),    # x, full seq
                pl.BlockSpec((1, tq, C), lambda b, qi: (b, qi, 0)),  # x, q tile
                pl.BlockSpec((C, C), const),                         # w_q (scaled)
                pl.BlockSpec((C, C), const),                         # w_k
                pl.BlockSpec((C, C), const),                         # w_v
                pl.BlockSpec((C, C), const),                         # w_proj
                pl.BlockSpec((1, C), const),                         # b_proj
            ],
            out_specs=[
                pl.BlockSpec((1, tq, C), lambda b, qi: (b, qi, 0)),
                pl.BlockSpec((1, H, tq, N), lambda b, qi: (b, 0, qi, 0)),
            ],
            scratch_shapes=[
                pltpu.VMEM((N, C), jnp.bfloat16),   # K projection (per batch)
                pltpu.VMEM((N, C), jnp.bfloat16),   # V projection (per batch)
            ],
        ),
        compiler_params=pltpu.CompilerParams(
            dimension_semantics=("parallel", "arbitrary"),
            vmem_limit_bytes=64 * 1024 * 1024,
        ),
    )(x, x, w_q, w_k, w_v, w_p, b_p)


def attention_reference(x, w_qkv, w_proj, b_proj, num_heads):
    """Pure-JAX f32 reference mirroring the PyTorch forward."""
    B, N, C = x.shape
    H = num_heads
    hd = C // H
    scale = hd ** (-0.5)
    qkv = jnp.einsum('bnc,cd->bnd', x, w_qkv)                 # (B, N, 3C)
    qkv = qkv.reshape(B, N, 3, H, hd).transpose(2, 0, 3, 1, 4)
    q, k, v = qkv[0], qkv[1], qkv[2]                          # (B, H, N, hd)
    attn = jnp.einsum('bhnd,bhmd->bhnm', q, k) * scale
    attn = jax.nn.softmax(attn, axis=-1)
    ctx = jnp.einsum('bhnm,bhmd->bhnd', attn, v)
    ctx = ctx.transpose(0, 2, 1, 3).reshape(B, N, C)
    y = jnp.einsum('bnc,cd->bnd', ctx, w_proj) + b_proj
    return y, attn


if __name__ == "__main__":
    def run_case(B, N, C, H, case):
        key = jax.random.fold_in(jax.random.PRNGKey(0), case)
        kx, k1, k2, k3 = jax.random.split(key, 4)
        x = jax.random.normal(kx, (B, N, C), dtype=jnp.float32)
        # Deterministic parameter init (qkv_bias=False => no qkv bias).
        w_qkv = 0.05 * jax.random.normal(k1, (C, 3 * C), dtype=jnp.float32)
        w_proj = 0.05 * jax.random.normal(k2, (C, C), dtype=jnp.float32)
        b_proj = 0.05 * jax.random.normal(k3, (C,), dtype=jnp.float32)

        y, attn = attention_forward(x, w_qkv, w_proj, b_proj, H)
        y = jax.block_until_ready(y)
        attn = jax.block_until_ready(attn)

        y_ref, attn_ref = attention_reference(x, w_qkv, w_proj, b_proj, H)
        # bf16 MXU operands + approx reciprocal => relaxed tolerances vs. f32.
        assert jnp.allclose(y, y_ref, atol=2e-2, rtol=2e-2), "output mismatch"
        assert jnp.allclose(attn, attn_ref, atol=1e-2, rtol=1e-2), "attn mismatch"

    # Small shape (single query tile per batch element).
    run_case(B=2, N=8, C=64, H=8, case=0)
    # Slightly longer sequence: exercises the (batch, query-tile) grid
    # (nq = 2) and the persistent K/V scratch reuse across query tiles.
    run_case(B=1, N=256, C=64, H=8, case=1)

    print("KERNEL_OK")
</pallas_src>

<mosaic_0001>
module attributes {stable_mosaic.version = 11 : i64} {
  func.func @_attention_kernel(%arg0: i32, %arg1: i32, %arg2: memref<1x8x64xf32, #tpu.memory_space<vmem>>, %arg3: memref<1x8x64xf32, #tpu.memory_space<vmem>>, %arg4: memref<64x64xbf16, #tpu.memory_space<vmem>>, %arg5: memref<64x64xbf16, #tpu.memory_space<vmem>>, %arg6: memref<64x64xbf16, #tpu.memory_space<vmem>>, %arg7: memref<64x64xbf16, #tpu.memory_space<vmem>>, %arg8: memref<1x64xf32, #tpu.memory_space<vmem>>, %arg9: memref<1x8x64xf32, #tpu.memory_space<vmem>>, %arg10: memref<1x8x8x8xf32, #tpu.memory_space<vmem>>, %arg11: memref<8x64xbf16, #tpu.memory_space<vmem>>, %arg12: memref<8x64xbf16, #tpu.memory_space<vmem>>) attributes {dimension_semantics = [#tpu.dimension_semantics<parallel>, #tpu.dimension_semantics<arbitrary>], iteration_bounds = array<i64: 2, 1>, scalar_prefetch = 0 : i64, scratch_operands = 2 : i64, tpu.core_type = #tpu.core_type<tc>, window_params = [{transform_indices = @transform_0, window_bounds = array<i64: 1, 8, 64>}, {transform_indices = @transform_1, window_bounds = array<i64: 1, 8, 64>}, {pipeline_mode = #tpu.pipeline_mode<synchronous>, transform_indices = @transform_2, window_bounds = array<i64: 64, 64>}, {pipeline_mode = #tpu.pipeline_mode<synchronous>, transform_indices = @transform_3, window_bounds = array<i64: 64, 64>}, {pipeline_mode = #tpu.pipeline_mode<synchronous>, transform_indices = @transform_4, window_bounds = array<i64: 64, 64>}, {pipeline_mode = #tpu.pipeline_mode<synchronous>, transform_indices = @transform_5, window_bounds = array<i64: 64, 64>}, {pipeline_mode = #tpu.pipeline_mode<synchronous>, transform_indices = @transform_6, window_bounds = array<i64: 1, 64>}, {transform_indices = @transform_7, window_bounds = array<i64: 1, 8, 64>}, {transform_indices = @transform_8, window_bounds = array<i64: 1, 8, 8, 8>}]} {
    %c0_i32 = arith.constant 0 : i32
    %0 = arith.cmpi eq, %arg1, %c0_i32 : i32
    %1 = arith.extui %0 : i1 to i32
    %c0_i32_0 = arith.constant 0 : i32
    %2 = arith.cmpi ne, %1, %c0_i32_0 : i32
    scf.if %2 {
      %c0_89 = arith.constant 0 : index
      %c0_90 = arith.constant 0 : index
      %c0_91 = arith.constant 0 : index
      %202 = vector.load %arg2[%c0_89, %c0_90, %c0_91] : memref<1x8x64xf32, #tpu.memory_space<vmem>>, vector<1x8x64xf32>
      %203 = vector.shape_cast %202 : vector<1x8x64xf32> to vector<8x64xf32>
      %204 = arith.truncf %203 : vector<8x64xf32> to vector<8x64xbf16>
      %c0_92 = arith.constant 0 : index
      %c0_93 = arith.constant 0 : index
      %205 = vector.load %arg5[%c0_92, %c0_93] : memref<64x64xbf16, #tpu.memory_space<vmem>>, vector<64x64xbf16>
      %cst_94 = arith.constant dense<0.000000e+00> : vector<8x64xf32>
      %206 = tpu.matmul %204, %205, %cst_94 {dimension_numbers = #tpu.dot_dimension_numbers<[1], [0], [0], [1], [0, 0, 1, 1], [], []>} : vector<8x64xbf16>, vector<64x64xbf16>, vector<8x64xf32> -> vector<8x64xf32>
      %207 = arith.truncf %206 : vector<8x64xf32> to vector<8x64xbf16>
      %c0_95 = arith.constant 0 : index
      %c0_96 = arith.constant 0 : index
      %208 = vector.load %arg11[%c0_95, %c0_96] : memref<8x64xbf16, #tpu.memory_space<vmem>>, vector<8x64xbf16>
      tpu.vector_store %arg11[%c0_95, %c0_96], %207 {strides = array<i32>} : memref<8x64xbf16, #tpu.memory_space<vmem>>, vector<8x64xbf16>,
      %c0_97 = arith.constant 0 : index
      %c0_98 = arith.constant 0 : index
      %209 = vector.load %arg6[%c0_97, %c0_98] : memref<64x64xbf16, #tpu.memory_space<vmem>>, vector<64x64xbf16>
      %cst_99 = arith.constant dense<0.000000e+00> : vector<8x64xf32>
      %210 = tpu.matmul %204, %209, %cst_99 {dimension_numbers = #tpu.dot_dimension_numbers<[1], [0], [0], [1], [0, 0, 1, 1], [], []>} : vector<8x64xbf16>, vector<64x64xbf16>, vector<8x64xf32> -> vector<8x64xf32>
      %211 = arith.truncf %210 : vector<8x64xf32> to vector<8x64xbf16>
      %c0_100 = arith.constant 0 : index
      %c0_101 = arith.constant 0 : index
      %212 = vector.load %arg12[%c0_100, %c0_101] : memref<8x64xbf16, #tpu.memory_space<vmem>>, vector<8x64xbf16>
      tpu.vector_store %arg12[%c0_100, %c0_101], %211 {strides = array<i32>} : memref<8x64xbf16, #tpu.memory_space<vmem>>, vector<8x64xbf16>,
    } else {
    }
    %c0 = arith.constant 0 : index
    %c0_1 = arith.constant 0 : index
    %c0_2 = arith.constant 0 : index
    %3 = vector.load %arg3[%c0, %c0_1, %c0_2] : memref<1x8x64xf32, #tpu.memory_space<vmem>>, vector<1x8x64xf32>
    %4 = vector.shape_cast %3 : vector<1x8x64xf32> to vector<8x64xf32>
    %5 = arith.truncf %4 : vector<8x64xf32> to vector<8x64xbf16>
    %c0_3 = arith.constant 0 : index
    %c0_4 = arith.constant 0 : index
    %6 = vector.load %arg4[%c0_3, %c0_4] : memref<64x64xbf16, #tpu.memory_space<vmem>>, vector<64x64xbf16>
    %cst = arith.constant dense<0.000000e+00> : vector<8x64xf32>
    %7 = tpu.matmul %5, %6, %cst {dimension_numbers = #tpu.dot_dimension_numbers<[1], [0], [0], [1], [0, 0, 1, 1], [], []>} : vector<8x64xbf16>, vector<64x64xbf16>, vector<8x64xf32> -> vector<8x64xf32>
    %8 = arith.truncf %7 : vector<8x64xf32> to vector<8x64xbf16>
    %c0_5 = arith.constant 0 : index
    %c0_6 = arith.constant 0 : index
    %9 = vector.load %arg11[%c0_5, %c0_6] : memref<8x64xbf16, #tpu.memory_space<vmem>>, vector<8x64xbf16>
    %c0_7 = arith.constant 0 : index
    %c0_8 = arith.constant 0 : index
    %10 = vector.load %arg12[%c0_7, %c0_8] : memref<8x64xbf16, #tpu.memory_space<vmem>>, vector<8x64xbf16>
    %cst_9 = arith.constant 0.000000e+00 : f32
    %11 = vector.broadcast %cst_9 : f32 to vector<8x64xf32>
    %12 = vector.extract_strided_slice %8 {offsets = [0, 0], sizes = [8, 8], strides = [1, 1]} : vector<8x64xbf16> to vector<8x8xbf16>
    %13 = vector.extract_strided_slice %9 {offsets = [0, 0], sizes = [8, 8], strides = [1, 1]} : vector<8x64xbf16> to vector<8x8xbf16>
    %14 = vector.extract_strided_slice %10 {offsets = [0, 0], sizes = [8, 8], strides = [1, 1]} : vector<8x64xbf16> to vector<8x8xbf16>
    %cst_10 = arith.constant dense<0.000000e+00> : vector<8x8xf32>
    %15 = tpu.matmul %12, %13, %cst_10 {dimension_numbers = #tpu.dot_dimension_numbers<[1], [1], [0], [0], [0, 0, 1, 0], [], []>} : vector<8x8xbf16>, vector<8x8xbf16>, vector<8x8xf32> -> vector<8x8xf32>
    %cst_11 = arith.constant dense<0xFF800000> : vector<8xf32>
    %16 = vector.multi_reduction <maximumf>, %15, %cst_11 [1] : vector<8x8xf32> to vector<8xf32>
    %17 = vector.shape_cast %16 : vector<8xf32> to vector<8x1xf32>
    %18 = vector.broadcast %17 : vector<8x1xf32> to vector<8x8xf32>
    %19 = arith.subf %15, %18 : vector<8x8xf32>
    %20 = math.exp %19 : vector<8x8xf32>
    %cst_12 = arith.constant dense<0.000000e+00> : vector<8xf32>
    %21 = vector.multi_reduction <add>, %20, %cst_12 [1] : vector<8x8xf32> to vector<8xf32>
    %22 = vector.shape_cast %21 : vector<8xf32> to vector<8x1xf32>
    %23 = tpu.reciprocal %22 {approx = true} : vector<8x1xf32> -> vector<8x1xf32>
    %24 = vector.broadcast %23 : vector<8x1xf32> to vector<8x8xf32>
    %25 = arith.mulf %20, %24 : vector<8x8xf32>
    %c0_13 = arith.constant 0 : index
    %c0_14 = arith.constant 0 : index
    %c0_15 = arith.constant 0 : index
    %c0_16 = arith.constant 0 : index
    %26 = vector.load %arg10[%c0_13, %c0_14, %c0_15, %c0_16] : memref<1x8x8x8xf32, #tpu.memory_space<vmem>>, vector<1x1x8x8xf32>
    %27 = vector.shape_cast %26 : vector<1x1x8x8xf32> to vector<8x8xf32>
    %28 = vector.shape_cast %25 : vector<8x8xf32> to vector<1x1x8x8xf32>
    tpu.vector_store %arg10[%c0_13, %c0_14, %c0_15, %c0_16], %28 {strides = array<i32>} : memref<1x8x8x8xf32, #tpu.memory_space<vmem>>, vector<1x1x8x8xf32>,
    %29 = arith.truncf %25 : vector<8x8xf32> to vector<8x8xbf16>
    %cst_17 = arith.constant dense<0.000000e+00> : vector<8x8xf32>
    %30 = tpu.matmul %29, %14, %cst_17 {dimension_numbers = #tpu.dot_dimension_numbers<[1], [0], [0], [1], [0, 0, 1, 1], [], []>} : vector<8x8xbf16>, vector<8x8xbf16>, vector<8x8xf32> -> vector<8x8xf32>
    %31 = arith.truncf %30 : vector<8x8xf32> to vector<8x8xbf16>
    %c0_18 = arith.constant 0 : index
    %c0_19 = arith.constant 0 : index
    %32 = vector.load %arg7[%c0_18, %c0_19] : memref<64x64xbf16, #tpu.memory_space<vmem>>, vector<8x64xbf16>
    %cst_20 = arith.constant dense<0.000000e+00> : vector<8x64xf32>
    %33 = tpu.matmul %31, %32, %cst_20 {dimension_numbers = #tpu.dot_dimension_numbers<[1], [0], [0], [1], [0, 0, 1, 1], [], []>} : vector<8x8xbf16>, vector<8x64xbf16>, vector<8x64xf32> -> vector<8x64xf32>
    %34 = arith.addf %11, %33 : vector<8x64xf32>
    %35 = vector.extract_strided_slice %8 {offsets = [0, 8], sizes = [8, 8], strides = [1, 1]} : vector<8x64xbf16> to vector<8x8xbf16>
    %36 = vector.extract_strided_slice %9 {offsets = [0, 8], sizes = [8, 8], strides = [1, 1]} : vector<8x64xbf16> to vector<8x8xbf16>
    %37 = vector.extract_strided_slice %10 {offsets = [0, 8], sizes = [8, 8], strides = [1, 1]} : vector<8x64xbf16> to vector<8x8xbf16>
    %cst_21 = arith.constant dense<0.000000e+00> : vector<8x8xf32>
    %38 = tpu.matmul %35, %36, %cst_21 {dimension_numbers = #tpu.dot_dimension_numbers<[1], [1], [0], [0], [0, 0, 1, 0], [], []>} : vector<8x8xbf16>, vector<8x8xbf16>, vector<8x8xf32> -> vector<8x8xf32>
    %cst_22 = arith.constant dense<0xFF800000> : vector<8xf32>
    %39 = vector.multi_reduction <maximumf>, %38, %cst_22 [1] : vector<8x8xf32> to vector<8xf32>
    %40 = vector.shape_cast %39 : vector<8xf32> to vector<8x1xf32>
    %41 = vector.broadcast %40 : vector<8x1xf32> to vector<8x8xf32>
    %42 = arith.subf %38, %41 : vector<8x8xf32>
    %43 = math.exp %42 : vector<8x8xf32>
    %cst_23 = arith.constant dense<0.000000e+00> : vector<8xf32>
    %44 = vector.multi_reduction <add>, %43, %cst_23 [1] : vector<8x8xf32> to vector<8xf32>
    %45 = vector.shape_cast %44 : vector<8xf32> to vector<8x1xf32>
    %46 = tpu.reciprocal %45 {approx = true} : vector<8x1xf32> -> vector<8x1xf32>
    %47 = vector.broadcast %46 : vector<8x1xf32> to vector<8x8xf32>
    %48 = arith.mulf %43, %47 : vector<8x8xf32>
    %c0_24 = arith.constant 0 : index
    %c1 = arith.constant 1 : index
    %c0_25 = arith.constant 0 : index
    %c0_26 = arith.constant 0 : index
    %49 = vector.load %arg10[%c0_24, %c1, %c0_25, %c0_26] : memref<1x8x8x8xf32, #tpu.memory_space<vmem>>, vector<1x1x8x8xf32>
    %50 = vector.shape_cast %49 : vector<1x1x8x8xf32> to vector<8x8xf32>
    %51 = vector.shape_cast %48 : vector<8x8xf32> to vector<1x1x8x8xf32>
    tpu.vector_store %arg10[%c0_24, %c1, %c0_25, %c0_26], %51 {strides = array<i32>} : memref<1x8x8x8xf32, #tpu.memory_space<vmem>>, vector<1x1x8x8xf32>,
    %52 = arith.truncf %48 : vector<8x8xf32> to vector<8x8xbf16>
    %cst_27 = arith.constant dense<0.000000e+00> : vector<8x8xf32>
    %53 = tpu.matmul %52, %37, %cst_27 {dimension_numbers = #tpu.dot_dimension_numbers<[1], [0], [0], [1], [0, 0, 1, 1], [], []>} : vector<8x8xbf16>, vector<8x8xbf16>, vector<8x8xf32> -> vector<8x8xf32>
    %54 = arith.truncf %53 : vector<8x8xf32> to vector<8x8xbf16>
    %c8 = arith.constant 8 : index
    %c0_28 = arith.constant 0 : index
    %55 = vector.load %arg7[%c8, %c0_28] : memref<64x64xbf16, #tpu.memory_space<vmem>>, vector<8x64xbf16>
    %cst_29 = arith.constant dense<0.000000e+00> : vector<8x64xf32>
    %56 = tpu.matmul %54, %55, %cst_29 {dimension_numbers = #tpu.dot_dimension_numbers<[1], [0], [0], [1], [0, 0, 1, 1], [], []>} : vector<8x8xbf16>, vector<8x64xbf16>, vector<8x64xf32> -> vector<8x64xf32>
    %57 = arith.addf %34, %56 : vector<8x64xf32>
    %58 = vector.extract_strided_slice %8 {offsets = [0, 16], sizes = [8, 8], strides = [1, 1]} : vector<8x64xbf16> to vector<8x8xbf16>
    %59 = vector.extract_strided_slice %9 {offsets = [0, 16], sizes = [8, 8], strides = [1, 1]} : vector<8x64xbf16> to vector<8x8xbf16>
    %60 = vector.extract_strided_slice %10 {offsets = [0, 16], sizes = [8, 8], strides = [1, 1]} : vector<8x64xbf16> to vector<8x8xbf16>
    %cst_30 = arith.constant dense<0.000000e+00> : vector<8x8xf32>
    %61 = tpu.matmul %58, %59, %cst_30 {dimension_numbers = #tpu.dot_dimension_numbers<[1], [1], [0], [0], [0, 0, 1, 0], [], []>} : vector<8x8xbf16>, vector<8x8xbf16>, vector<8x8xf32> -> vector<8x8xf32>
    %cst_31 = arith.constant dense<0xFF800000> : vector<8xf32>
    %62 = vector.multi_reduction <maximumf>, %61, %cst_31 [1] : vector<8x8xf32> to vector<8xf32>
    %63 = vector.shape_cast %62 : vector<8xf32> to vector<8x1xf32>
    %64 = vector.broadcast %63 : vector<8x1xf32> to vector<8x8xf32>
    %65 = arith.subf %61, %64 : vector<8x8xf32>
    %66 = math.exp %65 : vector<8x8xf32>
    %cst_32 = arith.constant dense<0.000000e+00> : vector<8xf32>
    %67 = vector.multi_reduction <add>, %66, %cst_32 [1] : vector<8x8xf32> to vector<8xf32>
    %68 = vector.shape_cast %67 : vector<8xf32> to vector<8x1xf32>
    %69 = tpu.reciprocal %68 {approx = true} : vector<8x1xf32> -> vector<8x1xf32>
    %70 = vector.broadcast %69 : vector<8x1xf32> to vector<8x8xf32>
    %71 = arith.mulf %66, %70 : vector<8x8xf32>
    %c0_33 = arith.constant 0 : index
    %c2 = arith.constant 2 : index
    %c0_34 = arith.constant 0 : index
    %c0_35 = arith.constant 0 : index
    %72 = vector.load %arg10[%c0_33, %c2, %c0_34, %c0_35] : memref<1x8x8x8xf32, #tpu.memory_space<vmem>>, vector<1x1x8x8xf32>
    %73 = vector.shape_cast %72 : vector<1x1x8x8xf32> to vector<8x8xf32>
    %74 = vector.shape_cast %71 : vector<8x8xf32> to vector<1x1x8x8xf32>
    tpu.vector_store %arg10[%c0_33, %c2, %c0_34, %c0_35], %74 {strides = array<i32>} : memref<1x8x8x8xf32, #tpu.memory_space<vmem>>, vector<1x1x8x8xf32>,
    %75 = arith.truncf %71 : vector<8x8xf32> to vector<8x8xbf16>
    %cst_36 = arith.constant dense<0.000000e+00> : vector<8x8xf32>
    %76 = tpu.matmul %75, %60, %cst_36 {dimension_numbers = #tpu.dot_dimension_numbers<[1], [0], [0], [1], [0, 0, 1, 1], [], []>} : vector<8x8xbf16>, vector<8x8xbf16>, vector<8x8xf32> -> vector<8x8xf32>
    %77 = arith.truncf %76 : vector<8x8xf32> to vector<8x8xbf16>
    %c16 = arith.constant 16 : index
    %c0_37 = arith.constant 0 : index
    %78 = vector.load %arg7[%c16, %c0_37] : memref<64x64xbf16, #tpu.memory_space<vmem>>, vector<8x64xbf16>
    %cst_38 = arith.constant dense<0.000000e+00> : vector<8x64xf32>
    %79 = tpu.matmul %77, %78, %cst_38 {dimension_numbers = #tpu.dot_dimension_numbers<[1], [0], [0], [1], [0, 0, 1, 1], [], []>} : vector<8x8xbf16>, vector<8x64xbf16>, vector<8x64xf32> -> vector<8x64xf32>
    %80 = arith.addf %57, %79 : vector<8x64xf32>
    %81 = vector.extract_strided_slice %8 {offsets = [0, 24], sizes = [8, 8], strides = [1, 1]} : vector<8x64xbf16> to vector<8x8xbf16>
    %82 = vector.extract_strided_slice %9 {offsets = [0, 24], sizes = [8, 8], strides = [1, 1]} : vector<8x64xbf16> to vector<8x8xbf16>
    %83 = vector.extract_strided_slice %10 {offsets = [0, 24], sizes = [8, 8], strides = [1, 1]} : vector<8x64xbf16> to vector<8x8xbf16>
    %cst_39 = arith.constant dense<0.000000e+00> : vector<8x8xf32>
    %84 = tpu.matmul %81, %82, %cst_39 {dimension_numbers = #tpu.dot_dimension_numbers<[1], [1], [0], [0], [0, 0, 1, 0], [], []>} : vector<8x8xbf16>, vector<8x8xbf16>, vector<8x8xf32> -> vector<8x8xf32>
    %cst_40 = arith.constant dense<0xFF800000> : vector<8xf32>
    %85 = vector.multi_reduction <maximumf>, %84, %cst_40 [1] : vector<8x8xf32> to vector<8xf32>
    %86 = vector.shape_cast %85 : vector<8xf32> to vector<8x1xf32>
    %87 = vector.broadcast %86 : vector<8x1xf32> to vector<8x8xf32>
    %88 = arith.subf %84, %87 : vector<8x8xf32>
    %89 = math.exp %88 : vector<8x8xf32>
    %cst_41 = arith.constant dense<0.000000e+00> : vector<8xf32>
    %90 = vector.multi_reduction <add>, %89, %cst_41 [1] : vector<8x8xf32> to vector<8xf32>
    %91 = vector.shape_cast %90 : vector<8xf32> to vector<8x1xf32>
    %92 = tpu.reciprocal %91 {approx = true} : vector<8x1xf32> -> vector<8x1xf32>
    %93 = vector.broadcast %92 : vector<8x1xf32> to vector<8x8xf32>
    %94 = arith.mulf %89, %93 : vector<8x8xf32>
    %c0_42 = arith.constant 0 : index
    %c3 = arith.constant 3 : index
    %c0_43 = arith.constant 0 : index
    %c0_44 = arith.constant 0 : index
    %95 = vector.load %arg10[%c0_42, %c3, %c0_43, %c0_44] : memref<1x8x8x8xf32, #tpu.memory_space<vmem>>, vector<1x1x8x8xf32>
    %96 = vector.shape_cast %95 : vector<1x1x8x8xf32> to vector<8x8xf32>
    %97 = vector.shape_cast %94 : vector<8x8xf32> to vector<1x1x8x8xf32>
    tpu.vector_store %arg10[%c0_42, %c3, %c0_43, %c0_44], %97 {strides = array<i32>} : memref<1x8x8x8xf32, #tpu.memory_space<vmem>>, vector<1x1x8x8xf32>,
    %98 = arith.truncf %94 : vector<8x8xf32> to vector<8x8xbf16>
    %cst_45 = arith.constant dense<0.000000e+00> : vector<8x8xf32>
    %99 = tpu.matmul %98, %83, %cst_45 {dimension_numbers = #tpu.dot_dimension_numbers<[1], [0], [0], [1], [0, 0, 1, 1], [], []>} : vector<8x8xbf16>, vector<8x8xbf16>, vector<8x8xf32> -> vector<8x8xf32>
    %100 = arith.truncf %99 : vector<8x8xf32> to vector<8x8xbf16>
    %c24 = arith.constant 24 : index
    %c0_46 = arith.constant 0 : index
    %101 = vector.load %arg7[%c24, %c0_46] : memref<64x64xbf16, #tpu.memory_space<vmem>>, vector<8x64xbf16>
    %cst_47 = arith.constant dense<0.000000e+00> : vector<8x64xf32>
    %102 = tpu.matmul %100, %101, %cst_47 {dimension_numbers = #tpu.dot_dimension_numbers<[1], [0], [0], [1], [0, 0, 1, 1], [], []>} : vector<8x8xbf16>, vector<8x64xbf16>, vector<8x64xf32> -> vector<8x64xf32>
    %103 = arith.addf %80, %102 : vector<8x64xf32>
    %104 = vector.extract_strided_slice %8 {offsets = [0, 32], sizes = [8, 8], strides = [1, 1]} : vector<8x64xbf16> to vector<8x8xbf16>
    %105 = vector.extract_strided_slice %9 {offsets = [0, 32], sizes = [8, 8], strides = [1, 1]} : vector<8x64xbf16> to vector<8x8xbf16>
    %106 = vector.extract_strided_slice %10 {offsets = [0, 32], sizes = [8, 8], strides = [1, 1]} : vector<8x64xbf16> to vector<8x8xbf16>
    %cst_48 = arith.constant dense<0.000000e+00> : vector<8x8xf32>
    %107 = tpu.matmul %104, %105, %cst_48 {dimension_numbers = #tpu.dot_dimension_numbers<[1], [1], [0], [0], [0, 0, 1, 0], [], []>} : vector<8x8xbf16>, vector<8x8xbf16>, vector<8x8xf32> -> vector<8x8xf32>
    %cst_49 = arith.constant dense<0xFF800000> : vector<8xf32>
    %108 = vector.multi_reduction <maximumf>, %107, %cst_49 [1] : vector<8x8xf32> to vector<8xf32>
    %109 = vector.shape_cast %108 : vector<8xf32> to vector<8x1xf32>
    %110 = vector.broadcast %109 : vector<8x1xf32> to vector<8x8xf32>
    %111 = arith.subf %107, %110 : vector<8x8xf32>
    %112 = math.exp %111 : vector<8x8xf32>
    %cst_50 = arith.constant dense<0.000000e+00> : vector<8xf32>
    %113 = vector.multi_reduction <add>, %112, %cst_50 [1] : vector<8x8xf32> to vector<8xf32>
    %114 = vector.shape_cast %113 : vector<8xf32> to vector<8x1xf32>
    %115 = tpu.reciprocal %114 {approx = true} : vector<8x1xf32> -> vector<8x1xf32>
    %116 = vector.broadcast %115 : vector<8x1xf32> to vector<8x8xf32>
    %117 = arith.mulf %112, %116 : vector<8x8xf32>
    %c0_51 = arith.constant 0 : index
    %c4 = arith.constant 4 : index
    %c0_52 = arith.constant 0 : index
    %c0_53 = arith.constant 0 : index
    %118 = vector.load %arg10[%c0_51, %c4, %c0_52, %c0_53] : memref<1x8x8x8xf32, #tpu.memory_space<vmem>>, vector<1x1x8x8xf32>
    %119 = vector.shape_cast %118 : vector<1x1x8x8xf32> to vector<8x8xf32>
    %120 = vector.shape_cast %117 : vector<8x8xf32> to vector<1x1x8x8xf32>
    tpu.vector_store %arg10[%c0_51, %c4, %c0_52, %c0_53], %120 {strides = array<i32>} : memref<1x8x8x8xf32, #tpu.memory_space<vmem>>, vector<1x1x8x8xf32>,
    %121 = arith.truncf %117 : vector<8x8xf32> to vector<8x8xbf16>
    %cst_54 = arith.constant dense<0.000000e+00> : vector<8x8xf32>
    %122 = tpu.matmul %121, %106, %cst_54 {dimension_numbers = #tpu.dot_dimension_numbers<[1], [0], [0], [1], [0, 0, 1, 1], [], []>} : vector<8x8xbf16>, vector<8x8xbf16>, vector<8x8xf32> -> vector<8x8xf32>
    %123 = arith.truncf %122 : vector<8x8xf32> to vector<8x8xbf16>
    %c32 = arith.constant 32 : index
    %c0_55 = arith.constant 0 : index
    %124 = vector.load %arg7[%c32, %c0_55] : memref<64x64xbf16, #tpu.memory_space<vmem>>, vector<8x64xbf16>
    %cst_56 = arith.constant dense<0.000000e+00> : vector<8x64xf32>
    %125 = tpu.matmul %123, %124, %cst_56 {dimension_numbers = #tpu.dot_dimension_numbers<[1], [0], [0], [1], [0, 0, 1, 1], [], []>} : vector<8x8xbf16>, vector<8x64xbf16>, vector<8x64xf32> -> vector<8x64xf32>
    %126 = arith.addf %103, %125 : vector<8x64xf32>
    %127 = vector.extract_strided_slice %8 {offsets = [0, 40], sizes = [8, 8], strides = [1, 1]} : vector<8x64xbf16> to vector<8x8xbf16>
    %128 = vector.extract_strided_slice %9 {offsets = [0, 40], sizes = [8, 8], strides = [1, 1]} : vector<8x64xbf16> to vector<8x8xbf16>
    %129 = vector.extract_strided_slice %10 {offsets = [0, 40], sizes = [8, 8], strides = [1, 1]} : vector<8x64xbf16> to vector<8x8xbf16>
    %cst_57 = arith.constant dense<0.000000e+00> : vector<8x8xf32>
    %130 = tpu.matmul %127, %128, %cst_57 {dimension_numbers = #tpu.dot_dimension_numbers<[1], [1], [0], [0], [0, 0, 1, 0], [], []>} : vector<8x8xbf16>, vector<8x8xbf16>, vector<8x8xf32> -> vector<8x8xf32>
    %cst_58 = arith.constant dense<0xFF800000> : vector<8xf32>
    %131 = vector.multi_reduction <maximumf>, %130, %cst_58 [1] : vector<8x8xf32> to vector<8xf32>
    %132 = vector.shape_cast %131 : vector<8xf32> to vector<8x1xf32>
    %133 = vector.broadcast %132 : vector<8x1xf32> to vector<8x8xf32>
    %134 = arith.subf %130, %133 : vector<8x8xf32>
    %135 = math.exp %134 : vector<8x8xf32>
    %cst_59 = arith.constant dense<0.000000e+00> : vector<8xf32>
    %136 = vector.multi_reduction <add>, %135, %cst_59 [1] : vector<8x8xf32> to vector<8xf32>
    %137 = vector.shape_cast %136 : vector<8xf32> to vector<8x1xf32>
    %138 = tpu.reciprocal %137 {approx = true} : vector<8x1xf32> -> vector<8x1xf32>
    %139 = vector.broadcast %138 : vector<8x1xf32> to vector<8x8xf32>
    %140 = arith.mulf %135, %139 : vector<8x8xf32>
    %c0_60 = arith.constant 0 : index
    %c5 = arith.constant 5 : index
    %c0_61 = arith.constant 0 : index
    %c0_62 = arith.constant 0 : index
    %141 = vector.load %arg10[%c0_60, %c5, %c0_61, %c0_62] : memref<1x8x8x8xf32, #tpu.memory_space<vmem>>, vector<1x1x8x8xf32>
    %142 = vector.shape_cast %141 : vector<1x1x8x8xf32> to vector<8x8xf32>
    %143 = vector.shape_cast %140 : vector<8x8xf32> to vector<1x1x8x8xf32>
    tpu.vector_store %arg10[%c0_60, %c5, %c0_61, %c0_62], %143 {strides = array<i32>} : memref<1x8x8x8xf32, #tpu.memory_space<vmem>>, vector<1x1x8x8xf32>,
    %144 = arith.truncf %140 : vector<8x8xf32> to vector<8x8xbf16>
    %cst_63 = arith.constant dense<0.000000e+00> : vector<8x8xf32>
    %145 = tpu.matmul %144, %129, %cst_63 {dimension_numbers = #tpu.dot_dimension_numbers<[1], [0], [0], [1], [0, 0, 1, 1], [], []>} : vector<8x8xbf16>, vector<8x8xbf16>, vector<8x8xf32> -> vector<8x8xf32>
    %146 = arith.truncf %145 : vector<8x8xf32> to vector<8x8xbf16>
    %c40 = arith.constant 40 : index
    %c0_64 = arith.constant 0 : index
    %147 = vector.load %arg7[%c40, %c0_64] : memref<64x64xbf16, #tpu.memory_space<vmem>>, vector<8x64xbf16>
    %cst_65 = arith.constant dense<0.000000e+00> : vector<8x64xf32>
    %148 = tpu.matmul %146, %147, %cst_65 {dimension_numbers = #tpu.dot_dimension_numbers<[1], [0], [0], [1], [0, 0, 1, 1], [], []>} : vector<8x8xbf16>, vector<8x64xbf16>, vector<8x64xf32> -> vector<8x64xf32>
    %149 = arith.addf %126, %148 : vector<8x64xf32>
    %150 = vector.extract_strided_slice %8 {offsets = [0, 48], sizes = [8, 8], strides = [1, 1]} : vector<8x64xbf16> to vector<8x8xbf16>
    %151 = vector.extract_strided_slice %9 {offsets = [0, 48], sizes = [8, 8], strides = [1, 1]} : vector<8x64xbf16> to vector<8x8xbf16>
    %152 = vector.extract_strided_slice %10 {offsets = [0, 48], sizes = [8, 8], strides = [1, 1]} : vector<8x64xbf16> to vector<8x8xbf16>
    %cst_66 = arith.constant dense<0.000000e+00> : vector<8x8xf32>
    %153 = tpu.matmul %150, %151, %cst_66 {dimension_numbers = #tpu.dot_dimension_numbers<[1], [1], [0], [0], [0, 0, 1, 0], [], []>} : vector<8x8xbf16>, vector<8x8xbf16>, vector<8x8xf32> -> vector<8x8xf32>
    %cst_67 = arith.constant dense<0xFF800000> : vector<8xf32>
    %154 = vector.multi_reduction <maximumf>, %153, %cst_67 [1] : vector<8x8xf32> to vector<8xf32>
    %155 = vector.shape_cast %154 : vector<8xf32> to vector<8x1xf32>
    %156 = vector.broadcast %155 : vector<8x1xf32> to vector<8x8xf32>
    %157 = arith.subf %153, %156 : vector<8x8xf32>
    %158 = math.exp %157 : vector<8x8xf32>
    %cst_68 = arith.constant dense<0.000000e+00> : vector<8xf32>
    %159 = vector.multi_reduction <add>, %158, %cst_68 [1] : vector<8x8xf32> to vector<8xf32>
    %160 = vector.shape_cast %159 : vector<8xf32> to vector<8x1xf32>
    %161 = tpu.reciprocal %160 {approx = true} : vector<8x1xf32> -> vector<8x1xf32>
    %162 = vector.broadcast %161 : vector<8x1xf32> to vector<8x8xf32>
    %163 = arith.mulf %158, %162 : vector<8x8xf32>
    %c0_69 = arith.constant 0 : index
    %c6 = arith.constant 6 : index
    %c0_70 = arith.constant 0 : index
    %c0_71 = arith.constant 0 : index
    %164 = vector.load %arg10[%c0_69, %c6, %c0_70, %c0_71] : memref<1x8x8x8xf32, #tpu.memory_space<vmem>>, vector<1x1x8x8xf32>
    %165 = vector.shape_cast %164 : vector<1x1x8x8xf32> to vector<8x8xf32>
    %166 = vector.shape_cast %163 : vector<8x8xf32> to vector<1x1x8x8xf32>
    tpu.vector_store %arg10[%c0_69, %c6, %c0_70, %c0_71], %166 {strides = array<i32>} : memref<1x8x8x8xf32, #tpu.memory_space<vmem>>, vector<1x1x8x8xf32>,
    %167 = arith.truncf %163 : vector<8x8xf32> to vector<8x8xbf16>
    %cst_72 = arith.constant dense<0.000000e+00> : vector<8x8xf32>
    %168 = tpu.matmul %167, %152, %cst_72 {dimension_numbers = #tpu.dot_dimension_numbers<[1], [0], [0], [1], [0, 0, 1, 1], [], []>} : vector<8x8xbf16>, vector<8x8xbf16>, vector<8x8xf32> -> vector<8x8xf32>
    %169 = arith.truncf %168 : vector<8x8xf32> to vector<8x8xbf16>
    %c48 = arith.constant 48 : index
    %c0_73 = arith.constant 0 : index
    %170 = vector.load %arg7[%c48, %c0_73] : memref<64x64xbf16, #tpu.memory_space<vmem>>, vector<8x64xbf16>
    %cst_74 = arith.constant dense<0.000000e+00> : vector<8x64xf32>
    %171 = tpu.matmul %169, %170, %cst_74 {dimension_numbers = #tpu.dot_dimension_numbers<[1], [0], [0], [1], [0, 0, 1, 1], [], []>} : vector<8x8xbf16>, vector<8x64xbf16>, vector<8x64xf32> -> vector<8x64xf32>
    %172 = arith.addf %149, %171 : vector<8x64xf32>
    %173 = vector.extract_strided_slice %8 {offsets = [0, 56], sizes = [8, 8], strides = [1, 1]} : vector<8x64xbf16> to vector<8x8xbf16>
    %174 = vector.extract_strided_slice %9 {offsets = [0, 56], sizes = [8, 8], strides = [1, 1]} : vector<8x64xbf16> to vector<8x8xbf16>
    %175 = vector.extract_strided_slice %10 {offsets = [0, 56], sizes = [8, 8], strides = [1, 1]} : vector<8x64xbf16> to vector<8x8xbf16>
    %cst_75 = arith.constant dense<0.000000e+00> : vector<8x8xf32>
    %176 = tpu.matmul %173, %174, %cst_75 {dimension_numbers = #tpu.dot_dimension_numbers<[1], [1], [0], [0], [0, 0, 1, 0], [], []>} : vector<8x8xbf16>, vector<8x8xbf16>, vector<8x8xf32> -> vector<8x8xf32>
    %cst_76 = arith.constant dense<0xFF800000> : vector<8xf32>
    %177 = vector.multi_reduction <maximumf>, %176, %cst_76 [1] : vector<8x8xf32> to vector<8xf32>
    %178 = vector.shape_cast %177 : vector<8xf32> to vector<8x1xf32>
    %179 = vector.broadcast %178 : vector<8x1xf32> to vector<8x8xf32>
    %180 = arith.subf %176, %179 : vector<8x8xf32>
    %181 = math.exp %180 : vector<8x8xf32>
    %cst_77 = arith.constant dense<0.000000e+00> : vector<8xf32>
    %182 = vector.multi_reduction <add>, %181, %cst_77 [1] : vector<8x8xf32> to vector<8xf32>
    %183 = vector.shape_cast %182 : vector<8xf32> to vector<8x1xf32>
    %184 = tpu.reciprocal %183 {approx = true} : vector<8x1xf32> -> vector<8x1xf32>
    %185 = vector.broadcast %184 : vector<8x1xf32> to vector<8x8xf32>
    %186 = arith.mulf %181, %185 : vector<8x8xf32>
    %c0_78 = arith.constant 0 : index
    %c7 = arith.constant 7 : index
    %c0_79 = arith.constant 0 : index
    %c0_80 = arith.constant 0 : index
    %187 = vector.load %arg10[%c0_78, %c7, %c0_79, %c0_80] : memref<1x8x8x8xf32, #tpu.memory_space<vmem>>, vector<1x1x8x8xf32>
    %188 = vector.shape_cast %187 : vector<1x1x8x8xf32> to vector<8x8xf32>
    %189 = vector.shape_cast %186 : vector<8x8xf32> to vector<1x1x8x8xf32>
    tpu.vector_store %arg10[%c0_78, %c7, %c0_79, %c0_80], %189 {strides = array<i32>} : memref<1x8x8x8xf32, #tpu.memory_space<vmem>>, vector<1x1x8x8xf32>,
    %190 = arith.truncf %186 : vector<8x8xf32> to vector<8x8xbf16>
    %cst_81 = arith.constant dense<0.000000e+00> : vector<8x8xf32>
    %191 = tpu.matmul %190, %175, %cst_81 {dimension_numbers = #tpu.dot_dimension_numbers<[1], [0], [0], [1], [0, 0, 1, 1], [], []>} : vector<8x8xbf16>, vector<8x8xbf16>, vector<8x8xf32> -> vector<8x8xf32>
    %192 = arith.truncf %191 : vector<8x8xf32> to vector<8x8xbf16>
    %c56 = arith.constant 56 : index
    %c0_82 = arith.constant 0 : index
    %193 = vector.load %arg7[%c56, %c0_82] : memref<64x64xbf16, #tpu.memory_space<vmem>>, vector<8x64xbf16>
    %cst_83 = arith.constant dense<0.000000e+00> : vector<8x64xf32>
    %194 = tpu.matmul %192, %193, %cst_83 {dimension_numbers = #tpu.dot_dimension_numbers<[1], [0], [0], [1], [0, 0, 1, 1], [], []>} : vector<8x8xbf16>, vector<8x64xbf16>, vector<8x64xf32> -> vector<8x64xf32>
    %195 = arith.addf %172, %194 : vector<8x64xf32>
    %c0_84 = arith.constant 0 : index
    %c0_85 = arith.constant 0 : index
    %196 = vector.load %arg8[%c0_84, %c0_85] : memref<1x64xf32, #tpu.memory_space<vmem>>, vector<1x64xf32>
    %197 = vector.broadcast %196 : vector<1x64xf32> to vector<8x64xf32>
    %198 = arith.addf %195, %197 : vector<8x64xf32>
    %c0_86 = arith.constant 0 : index
    %c0_87 = arith.constant 0 : index
    %c0_88 = arith.constant 0 : index
    %199 = vector.load %arg9[%c0_86, %c0_87, %c0_88] : memref<1x8x64xf32, #tpu.memory_space<vmem>>, vector<1x8x64xf32>
    %200 = vector.shape_cast %199 : vector<1x8x64xf32> to vector<8x64xf32>
    %201 = vector.shape_cast %198 : vector<8x64xf32> to vector<1x8x64xf32>
    tpu.vector_store %arg9[%c0_86, %c0_87, %c0_88], %201 {strides = array<i32>} : memref<1x8x64xf32, #tpu.memory_space<vmem>>, vector<1x8x64xf32>,
    return
  }
  func.func @transform_0(%arg0: i32, %arg1: i32) -> (i32, i32, i32) {
    %c0_i32 = arith.constant 0 : i32
    %c0_i32_0 = arith.constant 0 : i32
    %c0_i32_1 = arith.constant 0 : i32
    return %arg0, %c0_i32, %c0_i32_0 : i32, i32, i32
  }
  func.func @transform_1(%arg0: i32, %arg1: i32) -> (i32, i32, i32) {
    %c0_i32 = arith.constant 0 : i32
    %c0_i32_0 = arith.constant 0 : i32
    return %arg0, %arg1, %c0_i32 : i32, i32, i32
  }
  func.func @transform_2(%arg0: i32, %arg1: i32) -> (i32, i32) {
    %c0_i32 = arith.constant 0 : i32
    %c0_i32_0 = arith.constant 0 : i32
    %c0_i32_1 = arith.constant 0 : i32
    return %c0_i32, %c0_i32_0 : i32, i32
  }
  func.func @transform_3(%arg0: i32, %arg1: i32) -> (i32, i32) {
    %c0_i32 = arith.constant 0 : i32
    %c0_i32_0 = arith.constant 0 : i32
    %c0_i32_1 = arith.constant 0 : i32
    return %c0_i32, %c0_i32_0 : i32, i32
  }
  func.func @transform_4(%arg0: i32, %arg1: i32) -> (i32, i32) {
    %c0_i32 = arith.constant 0 : i32
    %c0_i32_0 = arith.constant 0 : i32
    %c0_i32_1 = arith.constant 0 : i32
    return %c0_i32, %c0_i32_0 : i32, i32
  }
  func.func @transform_5(%arg0: i32, %arg1: i32) -> (i32, i32) {
    %c0_i32 = arith.constant 0 : i32
    %c0_i32_0 = arith.constant 0 : i32
    %c0_i32_1 = arith.constant 0 : i32
    return %c0_i32, %c0_i32_0 : i32, i32
  }
  func.func @transform_6(%arg0: i32, %arg1: i32) -> (i32, i32) {
    %c0_i32 = arith.constant 0 : i32
    %c0_i32_0 = arith.constant 0 : i32
    %c0_i32_1 = arith.constant 0 : i32
    return %c0_i32, %c0_i32_0 : i32, i32
  }
  func.func @transform_7(%arg0: i32, %arg1: i32) -> (i32, i32, i32) {
    %c0_i32 = arith.constant 0 : i32
    %c0_i32_0 = arith.constant 0 : i32
    return %arg0, %arg1, %c0_i32 : i32, i32, i32
  }
  func.func @transform_8(%arg0: i32, %arg1: i32) -> (i32, i32, i32, i32) {
    %c0_i32 = arith.constant 0 : i32
    %c0_i32_0 = arith.constant 0 : i32
    %c0_i32_1 = arith.constant 0 : i32
    return %arg0, %c0_i32, %arg1, %c0_i32_0 : i32, i32, i32, i32
  }
}

</mosaic_0001>

<bundles_post_ra>
// kernel: tpu_custom_call.1
= control target key start
LH: loop header
LB: loop body
LE: loop exit
PB: predicated region body
PF: predicated region fallthrough
CT: control target
= control target key end

     0   :  { %s3738_s0 = inlined_call_operand.hbm [shape: f32[2,8,64], index: 0, kind: input, shape index: {}]   ;;  %s3739_s1 = inlined_call_operand.hbm [shape: f32[2,8,64], index: 1, kind: input, shape index: {}]   ;;  %s3740_s2 = inlined_call_operand.hbm [shape: bf16[64,64], index: 2, kind: input, shape index: {}]   ;;  %s3741_s3 = inlined_call_operand.hbm [shape: bf16[64,64], index: 3, kind: input, shape index: {}]   ;;  %s3742_s4 = inlined_call_operand.hbm [shape: bf16[64,64], index: 4, kind: input, shape index: {}]   ;;  %s3743_s5 = inlined_call_operand.hbm [shape: bf16[64,64], index: 5, kind: input, shape index: {}]   ;;  %s3744_s6 = inlined_call_operand.hbm [shape: f32[1,64], index: 6, kind: input, shape index: {}]   ;;  %s3745_s7 = inlined_call_operand.hbm [shape: f32[2,8,64], index: 7, kind: output, shape index: {0}]   ;;  %s3746_s8 = inlined_call_operand.hbm [shape: f32[2,8,8,8], index: 8, kind: output, shape index: {1}]  }
   0x1   :  { %3753 = sst [smem:[#allocation26_spill]] %s3740_s2 }
   0x2   :  { %3754 = sst [smem:[#allocation27_spill]] %s3741_s3 }
   0x3   :  { %3755 = sst [smem:[#allocation28_spill]] %s3742_s4 }
   0x4   :  { %3756 = sst [smem:[#allocation29_spill]] %s3743_s5 }
   0x5   :  { %3757 = sst [smem:[#allocation30_spill]] %s3744_s6 }
   0x6   :  { %3758 = sst [smem:[#allocation31_spill]] %s3745_s7 }
   0x7   :  { %3759 = sst [smem:[#allocation32_spill]] %s3746_s8 }
   0x8   :  { %14 = vsyncpa [#allocation5], 0 }
   0x9   :  { %16 = vsyncpa [#allocation5 + $0x1], 0 }
   0xa   :  { %17 = vsyncpa [#allocation8], 0 }
   0xb   :  { %19 = vsyncpa [#allocation8 + $0x1], 0 }
   0xc   :  { %20 = vsyncpa [#allocation11], 0 }
   0xd   :  { %21 = vsyncpa [#allocation14], 0 }
   0xe   :  { %22 = vsyncpa [#allocation6], 0 }
   0xf   :  { %24 = vsyncpa [#allocation6 + $0x1], 0 }
  0x10   :  { %25 = vsyncpa [#allocation18], 0 }
  0x11   :  { %27 = vsyncpa [#allocation18 + $0x1], 0  ;;  %s3121_s27 = smov 0   ;;  %s3123_s28 = smov 0  }
  0x12   :  { %s3125_s29 = smov 0   ;;  %s3127_s30 = smov 0  }
  0x13   :  { %s3129_s9 = smov 0   ;;  %s3131_s10 = smov 0  }
  0x14 LB: > { %s3152_s11 = sadd.s32 4294967295, %s3052_s10   ;;  %p2219_p0 = scmp.ge.s32.totalorder %s3052_s10, 1  ;;  %s3052_s10 = sphi %s3131_s10, %s33_s10   ;;  %s3048_s9 = sphi %s3129_s9, %s3791_s9   ;;  %s3044_s30 = sphi %s3127_s30, %s3790_s30   ;;  %s3040_s29 = sphi %s3125_s29, %s3789_s29   ;;  %s3036_s28 = sphi %s3123_s28, %s3788_s28   ;;  %s3032_s27 = sphi %s3121_s27, %s3787_s27  }
  0x15   : > { %p3749_p1 = scmp.eq.s32.totalorder %s3152_s11, 0  ;;  %p265_p2 = scmp.lt.s32.totalorder %s3052_s10, 3 }
  0x16   : > { %s3054_s13 = smov [#allocation9]   ;;  %s3055_s16 = smov [#allocation10]  }
  0x17   : > { %p3157_p3 = pnand %p2219_p0, %p265_p2  ;;  %s277_s14 = sshll.u32 %s3054_s13, 4  ;;  %s3161_s14 = int_to_ptr.vmem [resolvable:$true] %s277_s14 }
  0x18   : > { %s290_s17 = sshll.u32 %s3055_s16, 4  ;;  %s3056_s18 = smov [#allocation13]   ;;  %s3172_s17 = int_to_ptr.vmem [resolvable:$true] %s290_s17 }
  0x19   : > { %s3760_s12 = scalar_select %p3157_p3, 1, 0 }
  0x1a   : > { %p2568_p4 = pneg %p3157_p3  ;;  %s3174_s19 = sshll.u32 %s3056_s18, 4  ;;  %s317_s19 = int_to_ptr.vmem [resolvable:$true] %s3174_s19 }
  0x1b   : > { %s3762_s2 = sld [smem:[#allocation26_spill]] }
  0x1c   : > { %p3168_p6 = pnand %p2568_p4, %p3749_p1 }
  0x1e   : > { %p3184_p8 = pneg %p3168_p6 }
  0x21   : > { %s2722_s22 = scalar_lea.hbm %s3762_s2, 512 }
  0x22   : > { %p2723_p7 = scmp.ne.s32.totalorder %s3762_s2, %s2722_s22  ;;  %p2729_p11 = scmp.lt.u32.totalorder %s2722_s22, %s3762_s2 }
  0x24   : > { %p2725_p9 = pnand %p3184_p8, %p2723_p7 }
  0x26   : > { %p2726_p10 = pneg %p2725_p9 }
  0x28   : > { %p2731_p12 = pnand %p2729_p11, %p2726_p10 }
  0x2a   : > { %2734 = shalt.err (!%p2731_p12)
}
  0x2b   : > { %s2735_s16 = scalar_lea.vmem %s3161_s14, 512  ;;  %p2743_p4 = scmp.lt.s32.totalorder %s3161_s14, %s3161_s14 }
  0x2c   : > { %p2736_p13 = scmp.ne.s32.totalorder %s3161_s14, %s2735_s16  ;;  %p2744_p5 = scmp.lt.s32.totalorder %s2735_s16, %s2735_s16 }
  0x2e   : > { %p2738_p0 = pnand %p2736_p13, %p3184_p8  ;;  %p2745_p7 = por %p2744_p5, %p2743_p4 }
  0x30   : > { %p2739_p2 = pneg %p2738_p0 }
  0x32   : > { %p2746_p9 = pnand %p2745_p7, %p2739_p2 }
  0x34   : > { %2749 = shalt.err (!%p2746_p9)
}
  0x35   : > { %s3057_s18 = smov 64   ;;  %s3058_s20 = smov 4  }
  0x36   : > { %2571 = dma.hbm_to_vmem [thread:$0]  (!%p3168_p6), %s3762_s2, 512, %s3161_s14, [#allocation8], %s3057_s18, %s3057_s18, %s3058_s20  }
  0x37   : > { %s3764_s3 = sld [smem:[#allocation27_spill]] }
  0x3d   : > { %s2750_s26 = scalar_lea.hbm %s3764_s3, 512 }
  0x3e   : > { %p2751_p5 = scmp.ne.s32.totalorder %s3764_s3, %s2750_s26  ;;  %p2757_p12 = scmp.lt.u32.totalorder %s2750_s26, %s3764_s3 }
  0x40   : > { %p2753_p10 = pnand %p2751_p5, %p3184_p8 }
  0x42   : > { %p2754_p11 = pneg %p2753_p10 }
  0x44   : > { %p2759_p13 = pnand %p2757_p12, %p2754_p11 }
  0x46   : > { %2762 = shalt.err (!%p2759_p13)
}
  0x47   : > { %s2763_s14 = scalar_lea.vmem %s3172_s17, 512  ;;  %p2771_p7 = scmp.lt.s32.totalorder %s3172_s17, %s3172_s17 }
  0x48   : > { %p2764_p0 = scmp.ne.s32.totalorder %s3172_s17, %s2763_s14  ;;  %p2772_p9 = scmp.lt.s32.totalorder %s2763_s14, %s2763_s14 }
  0x4a   : > { %p2766_p2 = pnand %p2764_p0, %p3184_p8  ;;  %p2773_p5 = por %p2772_p9, %p2771_p7 }
  0x4c   : > { %p2767_p4 = pneg %p2766_p2 }
  0x4e   : > { %p2774_p10 = pnand %p2773_p5, %p2767_p4 }
  0x50   : > { %2777 = shalt.err (!%p2774_p10)
}
  0x51   : > { %2574 = dma.hbm_to_vmem [thread:$0]  (!%p3168_p6), %s3764_s3, 512, %s3172_s17, [#allocation11], %s3057_s18, %s3057_s18, %s3058_s20  }
  0x52   : > { %s3765_s5 = sld [smem:[#allocation29_spill]] }
  0x58   : > { %s2778_s23 = scalar_lea.hbm %s3765_s5, 512 }
  0x59   : > { %p2779_p11 = scmp.ne.s32.totalorder %s3765_s5, %s2778_s23  ;;  %p2785_p0 = scmp.lt.u32.totalorder %s2778_s23, %s3765_s5 }
  0x5b   : > { %p2781_p12 = pnand %p2779_p11, %p3184_p8 }
  0x5d   : > { %p2782_p13 = pneg %p2781_p12 }
  0x5f   : > { %p2787_p2 = pnand %p2785_p0, %p2782_p13 }
  0x61   : > { %2790 = shalt.err (!%p2787_p2)
}
  0x62   : > { %s2791_s14 = scalar_lea.vmem %s317_s19, 512  ;;  %p2799_p5 = scmp.lt.s32.totalorder %s317_s19, %s317_s19 }
  0x63   : > { %p2792_p4 = scmp.ne.s32.totalorder %s317_s19, %s2791_s14  ;;  %p2800_p10 = scmp.lt.s32.totalorder %s2791_s14, %s2791_s14 }
  0x65   : > { %p2794_p7 = pnand %p2792_p4, %p3184_p8  ;;  %p2801_p1 = por %p2800_p10, %p2799_p5 }
  0x67   : > { %p2795_p9 = pneg %p2794_p7 }
  0x69   : > { %p2802_p3 = pnand %p2801_p1, %p2795_p9 }
  0x6b   : > { %2805 = shalt.err (!%p2802_p3)
}
  0x6c   : > { %2580 = dma.hbm_to_vmem [thread:$0]  (!%p3168_p6), %s3765_s5, 512, %s317_s19, [#allocation14], %s3057_s18, %s3057_s18, %s3058_s20  }
  0x6d   : > { %s3059_s8 = smov [#allocation12]   ;;  %s3060_s22 = smov [#allocation15]  }
  0x6e   : > { %s303_s21 = sshll.u32 %s3059_s8, 4  ;;  %s330_s23 = sshll.u32 %s3060_s22, 4  ;;  %s304_s21 = int_to_ptr.vmem [resolvable:$true] %s303_s21  ;;  %s331_s23 = int_to_ptr.vmem [resolvable:$true] %s330_s23 }
  0x6f   : > { %s3766_s4 = sld [smem:[#allocation28_spill]] }
  0x75   : > { %s2806_s13 = scalar_lea.hbm %s3766_s4, 512 }
  0x76   : > { %p2807_p1 = scmp.ne.s32.totalorder %s3766_s4, %s2806_s13  ;;  %p2813_p12 = scmp.lt.u32.totalorder %s2806_s13, %s3766_s4 }
  0x78   : > { %p2809_p3 = pnand %p2807_p1, %p3184_p8 }
  0x7a   : > { %p2810_p11 = pneg %p2809_p3 }
  0x7c   : > { %p2815_p13 = pnand %p2813_p12, %p2810_p11 }
  0x7e   : > { %2818 = shalt.err (!%p2815_p13)
}
  0x7f   : > { %s2819_s19 = scalar_lea.vmem %s304_s21, 512  ;;  %p2827_p7 = scmp.lt.s32.totalorder %s304_s21, %s304_s21 }
  0x80   : > { %p2820_p0 = scmp.ne.s32.totalorder %s304_s21, %s2819_s19  ;;  %p2828_p9 = scmp.lt.s32.totalorder %s2819_s19, %s2819_s19 }
  0x82   : > { %p2822_p2 = pnand %p2820_p0, %p3184_p8  ;;  %p2829_p5 = por %p2828_p9, %p2827_p7 }
  0x84   : > { %p2823_p4 = pneg %p2822_p2 }
  0x86   : > { %p2830_p10 = pnand %p2829_p5, %p2823_p4 }
  0x88   : > { %2833 = shalt.err (!%p2830_p10)
}
  0x89   : > { %2577 = dma.hbm_to_vmem [thread:$0]  (!%p3168_p6), %s3766_s4, 512, %s304_s21, [#allocation11], %s3057_s18, %s3057_s18, %s3058_s20  }
  0x8a   : > { %s3767_s6 = sld [smem:[#allocation30_spill]] }
  0x90   : > { %s2834_s24 = scalar_lea.hbm %s3767_s6, 16 }
  0x91   : > { %p2835_p1 = scmp.ne.s32.totalorder %s3767_s6, %s2834_s24  ;;  %p2841_p12 = scmp.lt.u32.totalorder %s2834_s24, %s3767_s6 }
  0x93   : > { %p2837_p3 = pnand %p2835_p1, %p3184_p8 }
  0x95   : > { %p2838_p11 = pneg %p2837_p3 }
  0x97   : > { %p2843_p13 = pnand %p2841_p12, %p2838_p11 }
  0x99   : > { %2846 = shalt.err (!%p2843_p13)
}
  0x9a   : > { %s2847_s17 = scalar_lea.vmem %s331_s23, 16  ;;  %s2854_s18 = scalar_lea.vmem %s331_s23, 32 }
  0x9b   : > { %p2848_p0 = scmp.ne.s32.totalorder %s331_s23, %s2847_s17  ;;  %p2855_p7 = scmp.lt.s32.totalorder %s331_s23, %s331_s23 }
  0x9c   : > { %p2856_p9 = scmp.lt.s32.totalorder %s2854_s18, %s2847_s17 }
  0x9d   : > { %p2850_p2 = pnand %p2848_p0, %p3184_p8 }
  0x9e   : > { %p2857_p5 = por %p2856_p9, %p2855_p7 }
  0x9f   : > { %p2851_p4 = pneg %p2850_p2 }
  0xa1   : > { %p2858_p10 = pnand %p2857_p5, %p2851_p4 }
  0xa3   : > { %2861 = shalt.err (!%p2858_p10)
}
  0xa4   : > { %2583 = dma.hbm_to_vmem [thread:$0]  (!%p3168_p6), %s3767_s6, 16, %s331_s23, [#allocation14]  }
  0xa5   : > { %s2218_s25 = sadd.s32 4294967294, %s3052_s10   ;;  %s45_s19 = sadd.s32 1, %s3048_s9 }
  0xa6   : > { %s52_s15 = sadd.s32 1, %s3040_s29  ;;  %p47_p8 = scmp.ge.s32.totalorder %s45_s19, 2 }
  0xa7   : > { %p59_p1 = scmp.ne.s32.totalorder %s3040_s29, %s3036_s28  ;;  %p60_p3 = scmp.eq.s32.totalorder %s3052_s10, 0 }
  0xa8   : > { %p65_p11 = scmp.ne.s32.totalorder %s3036_s28, %s3032_s27  ;;  %s3793_s19 = smov (%p47_p8, %s45_s19), 0 }
  0xa9   : > { %p3305_p12 = por %p60_p3, %p59_p1  ;;  %p3769_p13 = scmp.eq.s32.totalorder %s3152_s11, 0 }
  0xaa   : > { %s49_s7 = ssub.s32 %s3048_s9, %s3793_s19  ;;  %p224_p0 = scmp.eq.s32.totalorder %s3152_s11, 1 }
  0xab   : > { %p3311_p6 = por %p3769_p13, %p65_p11  ;;  %p50_p2 = scmp.eq.s32.totalorder %s49_s7, 0 }
  0xac   : > { %p230_p4 = scmp.eq.s32.totalorder %s2218_s25, 1  ;;  %p3318_p7 = por %p224_p0, %p59_p1 }
  0xad   : > { %s3770_s23 = scalar_select %p3311_p6, 1, 0 }
  0xae   : > { %s3771_s8 = scalar_select %p3318_p7, 1, 0 }
  0xaf   : > { %p2603_p9 = scmp.lt.s32.totalorder %s3052_s10, 2  ;;  %p3326_p5 = por %p230_p4, %p65_p11 }
  0xb0   : > { %s3324_s22 = scalar_select %p50_p2, %s3040_s29, %s52_s15  }
  0xb1   : > { %s3772_s24 = scalar_select %p3326_p5, 1, 0 }
  0xb2   : > { %s341_s26 = sand.u32 1, %s3040_s29   ;;  %s2227_s16 = sshll.u32 %s3048_s9, 7 }
  0xb3   : > { %s3331_s13 = sshll.u32 %s341_s26, 3  ;;  %s3337_s18 = scalar_lea.hbm %s3738_s0, %s2227_s16 }
  0xb4   : > { %s345_s20 = scalar_lea.vmem [#allocation4], %s3331_s13  ;;  %p3344_p10 = pnand %p2603_p9, %p3305_p12 }
  0xb5   : > { %s352_s21 = sshll.u32 %s345_s20, 4  ;;  %s3351_s14 = scalar_lea.hbm %s3739_s1, %s2227_s16  ;;  %s3340_s21 = int_to_ptr.vmem [resolvable:$true] %s352_s21 }
  0xb6   : > { %s359_s17 = sand.u32 1, %s3052_s10   ;;  %s342_s3 = scalar_lea.sflag [#allocation5], %s341_s26 }
  0xb7   : > { %s2862_s4 = scalar_lea.hbm %s3337_s18, 128  ;;  %p2864_p1 = pneg %p3344_p10 }
  0xb8   : > { %p2863_p8 = scmp.ne.s32.totalorder %s3337_s18, %s2862_s4  ;;  %s2867_s5 = scalar_lea.hbm %s3738_s0, 256 }
  0xb9   : > { %p2868_p12 = scmp.lt.u32.totalorder %s3337_s18, %s3738_s0  ;;  %p2869_p13 = scmp.lt.u32.totalorder %s2867_s5, %s2862_s4 }
  0xba   : > { %p2865_p3 = pnand %p2864_p1, %p2863_p8  ;;  %p2871_p2 = scmp.lt.u32.totalorder %s2862_s4, %s3337_s18 }
  0xbb   : > { %p2870_p0 = por %p2869_p13, %p2868_p12 }
  0xbc   : > { %p2866_p11 = pneg %p2865_p3 }
  0xbd   : > { %p2872_p4 = por %p2871_p2, %p2870_p0 }
  0xbf   : > { %p2873_p9 = pnand %p2872_p4, %p2866_p11 }
  0xc1   : > { %2876 = shalt.err (!%p2873_p9)
}
  0xc2   : > { %s2877_s26 = scalar_lea.vmem %s3340_s21, 128  ;;  %s3061_s16 = smov [#allocation4]  }
  0xc3   : > { %p2878_p8 = scmp.ne.s32.totalorder %s3340_s21, %s2877_s26  ;;  %s2882_s7 = sshll.u32 %s3061_s16, 4  ;;  %s2883_s7 = int_to_ptr.vmem [resolvable:$false] %s2882_s7 }
  0xc4   : > { %s2884_s6 = scalar_lea.vmem %s2883_s7, 256  ;;  %p2885_p7 = scmp.lt.s32.totalorder %s3340_s21, %s2883_s7 }
  0xc5   : > { %p2880_p3 = pnand %p2878_p8, %p2864_p1  ;;  %p2886_p12 = scmp.lt.s32.totalorder %s2884_s6, %s2877_s26 }
  0xc7   : > { %p2881_p5 = pneg %p2880_p3  ;;  %p2887_p13 = por %p2886_p12, %p2885_p7 }
  0xc9   : > { %p2888_p0 = pnand %p2887_p13, %p2881_p5 }
  0xcb   : > { %2891 = shalt.err (!%p2888_p0)
}
  0xcc   : > { %2587 = dma.hbm_to_vmem [thread:$0]  (!%p3344_p10), %s3337_s18, 128, %s3340_s21, %s342_s3  }
  0xcd   : > { %s363_s4 = scalar_lea.vmem [#allocation7], %s3331_s13  ;;  %s360_s2 = scalar_lea.sflag [#allocation8], %s359_s17 }
  0xce   : > { %s371_s5 = sshll.u32 %s363_s4, 4  ;;  %s2892_s20 = scalar_lea.hbm %s3351_s14, 128  ;;  %s372_s5 = int_to_ptr.vmem [resolvable:$true] %s371_s5 }
  0xcf   : > { %p2893_p7 = scmp.ne.s32.totalorder %s3351_s14, %s2892_s20  ;;  %s2897_s16 = scalar_lea.hbm %s3739_s1, 256 }
  0xd0   : > { %p2898_p2 = scmp.lt.u32.totalorder %s3351_s14, %s3739_s1  ;;  %p2899_p4 = scmp.lt.u32.totalorder %s2897_s16, %s2892_s20 }
  0xd1   : > { %p2895_p5 = pnand %p2893_p7, %p2864_p1  ;;  %p2901_p8 = scmp.lt.u32.totalorder %s2892_s20, %s3351_s14 }
  0xd2   : > { %p2900_p9 = por %p2899_p4, %p2898_p2 }
  0xd3   : > { %p2896_p11 = pneg %p2895_p5 }
  0xd4   : > { %p2902_p3 = por %p2901_p8, %p2900_p9 }
  0xd6   : > { %p2903_p12 = pnand %p2902_p3, %p2896_p11 }
  0xd8   : > { %2906 = shalt.err (!%p2903_p12)
}
  0xd9   : > { %s2907_s3 = scalar_lea.vmem %s372_s5, 128  ;;  %s3062_s13 = smov [#allocation7]  }
  0xda   : > { %p2908_p13 = scmp.ne.s32.totalorder %s372_s5, %s2907_s3  ;;  %s2912_s18 = sshll.u32 %s3062_s13, 4  ;;  %s2913_s18 = int_to_ptr.vmem [resolvable:$false] %s2912_s18 }
  0xdb   : > { %s2914_s21 = scalar_lea.vmem %s2913_s18, 256  ;;  %p2915_p5 = scmp.lt.s32.totalorder %s372_s5, %s2913_s18 }
  0xdc   : > { %p2910_p0 = pnand %p2908_p13, %p2864_p1  ;;  %p2916_p6 = scmp.lt.s32.totalorder %s2914_s21, %s2907_s3 }
  0xde   : > { %p2911_p7 = pneg %p2910_p0  ;;  %p2917_p2 = por %p2916_p6, %p2915_p5 }
  0xe0   : > { %p2918_p4 = pnand %p2917_p2, %p2911_p7 }
  0xe2   : > { %2921 = shalt.err (!%p2918_p4)
}
  0xe3   : > { %2590 = dma.hbm_to_vmem [thread:$0]  (!%p3344_p10), %s3351_s14, 128, %s372_s5, %s360_s2  }
  0xe4   : > { %p3774_p11 = scmp.ne.s32.totalorder %s3760_s12, 0 }
  0xe5   : > { %s3404_s17 = sand.u32 (!%p3774_p11), 1, %s3036_s28   ;;  %p3775_p6 = scmp.ne.s32.totalorder (!%p3774_p11), %s3770_s23, 0 }
  0xe6   : > { %380 = sbr.rel (%p3774_p11) target bundleno = 5018 (0x139a), region = 48  ;;  %s3407_s4 = sshll.u32 (!%p3774_p11), %s3404_s17, 3 }
  0xe7   : > { %s383_s20 = scalar_lea.sflag (!%p3774_p11), [#allocation5], %s3404_s17  ;;  %s386_s15 = scalar_lea.vmem (!%p3774_p11), [#allocation4], %s3407_s4 }
  0xed   : > { %3003 = dma.done.wait (%p3775_p6), %s383_s20, 128  }
  0xee   : > { %3005 = vsyncadd (%p3775_p6), %s383_s20, 4294967168  ;;  %s391_s12 = sand.u32 1, %s3152_s11   ;;  %s395_s14 = scalar_lea.vmem [#allocation7], %s3407_s4 }
  0xef   : > { %s392_s25 = scalar_lea.sflag [#allocation8], %s391_s12 }
  0xf0   : > { %3007 = dma.done.wait (%p3775_p6), %s392_s25, 128  }
  0xf1   : > { %3009 = vsyncadd (%p3775_p6), %s392_s25, 4294967168  ;;  %p3776_p10 = scmp.eq.s32.totalorder %s3152_s11, 0 }
  0xf3   : > { %3011 = dma.done.wait (%p3776_p10), [#allocation8], 512   ;;  %p3777_p1 = pmov %p3776_p10 }
  0xf5   : > { %3013 = vsyncadd (%p3777_p1), [#allocation8], 4294966784  ;;  %p3778_p9 = pmov %p3777_p1 }
  0xf6   : > { %p3779_p8 = pmov %p3777_p1 }
  0xf7   : > { %3015 = dma.done.wait (%p3778_p9), [#allocation11], 1024  }
  0xf8   : > { %3017 = vsyncadd (%p3779_p8), [#allocation11], 4294966272  ;;  %p3780_p3 = pmov %p3777_p1 }
  0xf9   : > { %p3781_p12 = pmov %p3777_p1 }
  0xfa   : > { %3019 = dma.done.wait (%p3780_p3), [#allocation14], 528  }
  0xfb   : > { %3021 = vsyncadd (%p3781_p12), [#allocation14], 4294966768  ;;  %v3063_v0 = vmov 0.0   ;;  %vm3064_vm0 = vmmov 0   ;;  %v2676_v1 = vld [vmem:[#allocation10] sm:$0xff]   ;;  %v2677_v2 = vld [vmem:[#allocation10 + $0x8] sm:$0xff]  }
  0xfc   : > { %2360 = vmatprep.subr.bf16.mxu0 %v3063_v0  ;;  %2368 = vmatprep.mubr.msk.bf16.mxu0 %vm3064_vm0, %v3063_v0  ;;  %v2678_v3 = vld [vmem:[#allocation10 + $0x10] sm:$0xff]   ;;  %v2679_v4 = vld [vmem:[#allocation10 + $0x18] sm:$0xff]   ;;  %v2684_v5 = vld [vmem:[#allocation12] sm:$0xff]   ;;  %vm497_vm1 = vcmask 523264   ;;  %vm542_vm2 = vcmask 519168   ;;  %vm699_vm3 = vcmask 64512  }
  0xfd   : > { %2372 = vmatprep.subr.bf16.mxu1 %v3063_v0  ;;  %2380 = vmatprep.mubr.msk.bf16.mxu1 %vm3064_vm0, %v3063_v0  ;;  %v463_v6 = vld [vmem:[%s386_s15] sm:$0xff]  ;;  %v2686_v10 = vld [vmem:[#allocation12 + $0x10] sm:$0xff]   ;;  %v2683_v13 = vld [vmem:[#allocation9 + $0x18] sm:$0xff]   ;;  %s3065_s11 = smov 120   ;;  %vm762_vm4 = vcmask 1043456   ;;  %s3066_s23 = smov 112  }
  0xfe   : > { %2361 = vmatpush3.bf16.msra.mxu0 %v2676_v1  ;;  %2373 = vmatpush3.bf16.msra.mxu1 %v2684_v5  ;;  %v2685_v7 = vld [vmem:[#allocation12 + $0x8] sm:$0xff]   ;;  %v464_v8 = vpack.c.bf16 %v463_v6, %v463_v6  ;;  %v2680_v9 = vld [vmem:[#allocation9] sm:$0xff]   ;;  %v2682_v12 = vld [vmem:[#allocation9 + $0x10] sm:$0xff]   ;;  %s2239_s5 = sshll.u32 %s3404_s17, 6  ;;  %s3067_s26 = smov 104  }
  0xff   : > { %2362 = vmatprep.subr.bf16.mxu0 %v3063_v0  ;;  %2374 = vmatprep.subr.bf16.mxu1 %v3063_v0  ;;  %v2681_v11 = vld [vmem:[#allocation9 + $0x8] sm:$0xff]   ;;  %v618_v14 = vld [vmem:[%s395_s14] sm:$0xff]  ;;  %s3497_s2 = scalar_lea.vmem [#allocation17], %s2239_s5  ;;  %s3068_s16 = smov 96  }
 0x100   : > { %v619_v15 = vpack.c.bf16 %v618_v14, %v618_v14  ;;  %v2687_v16 = vld [vmem:[#allocation12 + $0x18] sm:$0xff]   ;;  %s3069_s7 = smov 88   ;;  %s3070_s6 = smov 80  }
 0x101   : > { %s3071_s3 = smov 72   ;;  %s2296_s13 = sshll.u32 %s3044_s30, 10 }
 0x102   : > { %2363 = vmatpush3.bf16.msra.mxu0 %v2677_v2  ;;  %2375 = vmatpush3.bf16.msra.mxu1 %v2685_v7  ;;  %v928_v2 = vld [vmem:[#allocation13 + $0x4] sm:$0xf]  ;;  %s2030_s18 = sshll.u32 %s3497_s2, 4  ;;  %s3782_s15 = sld [smem:[#allocation32_spill]]  ;;  %s3657_s18 = int_to_ptr.vmem [resolvable:$true] %s2030_s18 }
 0x103   : > { %2364 = vmatprep.subr.bf16.mxu0 %v3063_v0  ;;  %2376 = vmatprep.subr.bf16.mxu1 %v3063_v0  ;;  %s2002_s25 = scalar_lea.sflag [#allocation18], %s3404_s17  ;;  %s2922_s14 = scalar_lea.vmem %s3657_s18, 1024 }
 0x104   : > { %p2923_p13 = scmp.ne.s32.totalorder %s3657_s18, %s2922_s14  ;;  %p3783_p0 = scmp.ne.s32.totalorder %s3771_s8, 0 }
 0x106   : > { %2365 = vmatpush3.bf16.msra.mxu0 %v2678_v3  ;;  %2377 = vmatpush3.bf16.msra.mxu1 %v2686_v10  ;;  %v933_v3 = vsel %vm762_vm4, %v928_v2, 0  ;;  %p2924_p7 = pnand %p2923_p13, %p3783_p0 }
 0x107   : > { %2366 = vmatprep.subr.bf16.mxu0 %v3063_v0  ;;  %2378 = vmatprep.subr.bf16.mxu1 %v3063_v0 }
 0x108   : > { %s3655_s12 = scalar_lea.hbm %s3782_s15, %s2296_s13  ;;  %p2925_p5 = pneg %p2924_p7 }
 0x10a   : > { %2367 = vmatpush3.bf16.msra.mxu0 %v2679_v4  ;;  %2379 = vmatpush3.bf16.msra.mxu1 %v2687_v16 }
 0x10b   : > { %2384 = vmatprep.subr.bf16.mxu0 %v3063_v0  ;;  %2396 = vmatprep.subr.bf16.mxu1 %v3063_v0 }
 0x10d   : > { %2369 = vmatmul.mubr.msk.bf16.vlgmr.msra.gmra.mrb[0].mxu0 %vm497_vm1, %v464_v8  ;;  %2381 = vmatmul.mubr.msk.bf16.vlgmr.msra.gmra.mrb[0].mxu1 %vm497_vm1, %v464_v8  ;;  %v807_v8 = vld [vmem:[#allocation13] sm:$0xf] }
 0x10e   : > { %2385 = vmatpush3.bf16.msra.mxu0 %v2680_v9  ;;  %2392 = vmatprep.mubr.msk.bf16.mxu0 %vm3064_vm0, %v3063_v0 }
 0x10f   : > { %2386 = vmatprep.subr.bf16.mxu0 %v3063_v0  ;;  %2398 = vmatprep.mubr.msk.bf16.mxu1 %vm3064_vm0, %v3063_v0 }
 0x112   : > { %2387 = vmatpush3.bf16.msra.mxu0 %v2681_v11  ;;  %v979_v11 = vsel %vm762_vm4, %v807_v8, 0 }
 0x113   : > { %2388 = vmatprep.subr.bf16.mxu0 %v3063_v0 }
 0x116   : > { %2389 = vmatpush3.bf16.msra.mxu0 %v2682_v12 }
 0x117   : > { %2390 = vmatprep.subr.bf16.mxu0 %v3063_v0 }
 0x11a   : > { %2391 = vmatpush3.bf16.msra.mxu0 %v2683_v13 }
 0x11b   : > { %2408 = vmatprep.subr.bf16.mxu0 %v3063_v0 }
 0x11d   : > { %2393 = vmatmul.mubr.msk.bf16.vlgmr.msra.gmra.mrb[4].mxu0 %vm497_vm1, %v619_v15 }
 0x11e   : > { %2410 = vmatprep.mubr.msk.bf16.mxu0 %vm3064_vm0, %v3063_v0 }
 0x1e0   : > { %v535_v17 = vpop.f32.mrb[0].mxu0  ;;  %v610_v30 = vpop.f32.mrb[0].mxu1 }
 0x1e1   : > { %v541_v18 = vpack.c.bf16 %v535_v17, %v535_v17  ;;  %v2370_v19 = vpop.f32.mrb[1].mxu0  ;;  %v616_v31 = vpack.c.bf16 %v610_v30, %v610_v30  ;;  %v2382_v32 = vpop.f32.mrb[1].mxu1 }
 0x1e2   : > { %v538_v20 = vpop.f32.mrb[2].mxu0  ;;  %v613_v33 = vpop.f32.mrb[2].mxu1 }
 0x1e3   : > { %543 = vst.msk [vmem:[#allocation2] sm:$0xf] %vm542_vm2, %v541_v18  ;;  %v2371_v21 = vpop.f32.mrb[3].mxu0  ;;  %617 = vst.msk [vmem:[#allocation3] sm:$0xf] %vm542_vm2, %v616_v31  ;;  %v2383_v34 = vpop.f32.mrb[3].mxu1 }
 0x1ea   : > { %v697_v22 = vld [vmem:[#allocation2] sm:$0xf]  ;;  %v698_v35 = vld [vmem:[#allocation3] sm:$0xf] }
 0x1eb   : > { %v704_v23 = vsel %vm699_vm3, %v697_v22, 0  ;;  %v3464_v24 = vcombine.low %v697_v22, %v697_v22  ;;  %v764_v36 = vsel %vm762_vm4, %v698_v35, 0  ;;  %v3488_v55 = vcombine.low %v698_v35, %v698_v35 }
 0x1ec   : > { %2397 = vmatpush3.bf16.xpose.msra.mxu1 %v704_v23 }
 0x1ed   : > { %814 = vrot.lane.b32.xlu0 %v3464_v24, %s3065_s11  ;;  %2402 = vmatprep.subr.bf16.mxu1 %v3063_v0 }
 0x1f0   : > { %v690_v25 = vpop.f32.mrb[4].mxu0 }
 0x1f1   : > { %v3469_v26 = vpack.c.bf16 %v690_v25, %v690_v25  ;;  %v2394_v27 = vpop.f32.mrb[5].mxu0 }
 0x1f2   : > { %v693_v28 = vpop.f32.mrb[6].mxu0 }
 0x1f3   : > { %v2395_v29 = vpop.f32.mrb[7].mxu0  ;;  %2399 = vmatmul.mubr.msk.bf16.vlgmr.msra.gmra.mrb[4].mxu1 %vm699_vm3, %v3469_v26  ;;  %809 = vrot.lane.b32.xlu0 %v3469_v26, %s3065_s11 }
 0x1f4   : > { %2404 = vmatprep.mubr.msk.bf16.mxu1 %vm3064_vm0, %v3063_v0  ;;  %2403 = vmatpush3.bf16.msra.mxu1 %v764_v36 }
 0x1f5   : > { %2414 = vmatprep.subr.bf16.mxu1 %v3063_v0 }
 0x25f   : > { %v815_v37 = vpop.permute.xlu0 %814 }
 0x260   : > { %v820_v38 = vsel %vm699_vm3, %v815_v37, 0 }
 0x261   : > { %2409 = vmatpush3.bf16.xpose.msra.mxu0 %v820_v38 }
 0x262   : > { %2420 = vmatprep.subr.bf16.mxu0 %v3063_v0 }
 0x265   : > { %v810_v39 = vpop.permute.xlu0 %809 }
 0x268   : > { %2411 = vmatmul.mubr.msk.bf16.vlgmr.msra.gmra.mrb[8].mxu0 %vm699_vm3, %v810_v39 }
 0x269   : > { %2422 = vmatprep.mubr.msk.bf16.mxu0 %vm3064_vm0, %v3063_v0  ;;  %2421 = vmatpush3.bf16.msra.mxu0 %v933_v3 }
 0x26a   : > { %2432 = vmatprep.subr.bf16.mxu0 %v3063_v0 }
 0x2c6   : > { %v740_v40 = vpop.f32.mrb[4].mxu1 }
 0x2c7   : > { %v2400_v41 = vpop.f32.mrb[5].mxu1  ;;  %v746_v42 = vsel %vm699_vm3, %v740_v40, -inf }
 0x2c8   : > { %747 = vmax.xlane.f32.xlu1 %v746_v42  ;;  %v743_v43 = vpop.f32.mrb[6].mxu1 }
 0x2c9   : > { %v2401_v44 = vpop.f32.mrb[7].mxu1 }
 0x33b   : > { %v856_v45 = vpop.f32.mrb[8].mxu0 }
 0x33c   : > { %v2412_v46 = vpop.f32.mrb[9].mxu0  ;;  %v862_v47 = vsel %vm699_vm3, %v856_v45, -inf }
 0x33d   : > { %863 = vmax.xlane.f32.xlu1 %v862_v47  ;;  %v859_v48 = vpop.f32.mrb[10].mxu0 }
 0x33e   : > { %v2413_v49 = vpop.f32.mrb[11].mxu0  ;;  %v1134_v48 = vld [vmem:[#allocation13 + $0x8] sm:$0xf] }
 0x33f   : > { %v1139_v49 = vsel %vm762_vm4, %v1134_v48, 0 }
 0x355   : > { %v748_v50 = vpop.xlane.xlu1 %747 }
 0x356   : > { %v749_v51 = vsub.f32 %v740_v40, %v748_v50 }
 0x358   : > { %v750_v52 = vmul.f32 1.442695, %v749_v51 }
 0x35a   : > { %2690 = vpow2.f32 %v750_v52 }
 0x364   : > { %v2691_v53 = vpop.eup %2690 }
 0x365   : > { %v752_v54 = vsel %vm699_vm3, %v2691_v53, 0.0 }
 0x366   : > { %753 = vadd.xlane.f32.xlu0 %v752_v54 }
 0x37c   : > { %1085 = vrot.lane.b32.xlu0 %v3488_v55, %s3066_s23 }
 0x3ca   : > { %v864_v56 = vpop.xlane.xlu1 %863 }
 0x3cb   : > { %v865_v57 = vsub.f32 %v856_v45, %v864_v56 }
 0x3cd   : > { %v866_v58 = vmul.f32 1.442695, %v865_v57 }
 0x3cf   : > { %2692 = vpow2.f32 %v866_v58 }
 0x3d9   : > { %v2693_v59 = vpop.eup %2692 }
 0x3da   : > { %v868_v60 = vsel %vm699_vm3, %v2693_v59, 0.0 }
 0x3db   : > { %869 = vadd.xlane.f32.xlu1 %v868_v60 }
 0x3ec   : > { %879 = vrot.lane.b32.xlu1 %v3488_v55, %s3065_s11  ;;  %s3072_s11 = smov [#allocation17]  }
 0x3f0   : > { %1023 = vrot.lane.b32.xlu1 %v3464_v24, %s3066_s23 }
 0x3f3   : > { %v754_v61 = vpop.xlane.xlu0 %753 }
 0x3f4   : > { %2694 = vrcp.f32 %v754_v61  ;;  %1021 = vrot.lane.b32.xlu1 %v3469_v26, %s3066_s23  ;;  %s2926_s23 = sshll.u32 %s3072_s11, 4  ;;  %s2927_s23 = int_to_ptr.vmem [resolvable:$false] %s2926_s23 }
 0x3f5   : > { %s2928_s5 = scalar_lea.vmem %s2927_s23, 2048  ;;  %p2929_p2 = scmp.lt.s32.totalorder %s3657_s18, %s2927_s23 }
 0x3f6   : > { %p2930_p4 = scmp.lt.s32.totalorder %s2928_s5, %s2922_s14 }
 0x3f7   : > { %v1086_v12 = vpop.permute.xlu0 %1085 }
 0x3f8   : > { %v1091_v17 = vsel %vm762_vm4, %v1086_v12, 0  ;;  %v1295_v12 = vld [vmem:[#allocation13 + $0xc] sm:$0xf]  ;;  %p2931_p11 = por %p2930_p4, %p2929_p2 }
 0x3fa   : > { %p2932_p6 = pnand %p2931_p11, %p2925_p5 }
 0x3fe   : > { %v2695_v62 = vpop.eup %2694 }
 0x3ff   : > { %v756_v63 = vmul.f32 %v2695_v62, %v2691_v53 }
 0x401   : > { %757 = vst.msk [vmem:[%s3497_s2] sm:$0xff] %vm699_vm3, %v756_v63  ;;  %v758_v1 = vpack.c.bf16 %v756_v63, %v756_v63 }
 0x403   : > { %2405 = vmatmul.mubr.msk.bf16.vlgmr.msra.gmra.mrb[8].mxu1 %vm699_vm3, %v758_v1 }
 0x404   : > { %2416 = vmatprep.mubr.msk.bf16.mxu1 %vm3064_vm0, %v3063_v0 }
 0x468   : > { %v870_v4 = vpop.xlane.xlu1 %869 }
 0x469   : > { %2696 = vrcp.f32 %v870_v4 }
 0x46c   : > { %v880_v5 = vpop.permute.xlu1 %879 }
 0x46d   : > { %v885_v6 = vsel %vm762_vm4, %v880_v5, 0 }
 0x46e   : > { %2415 = vmatpush3.bf16.msra.mxu1 %v885_v6 }
 0x46f   : > { %2426 = vmatprep.subr.bf16.mxu1 %v3063_v0 }
 0x470   : > { %v1024_v19 = vpop.permute.xlu1 %1023 }
 0x471   : > { %v1029_v25 = vsel %vm699_vm3, %v1024_v19, 0 }
 0x473   : > { %v2697_v7 = vpop.eup %2696 }
 0x474   : > { %v872_v9 = vmul.f32 %v2697_v7, %v2693_v59  ;;  %v1022_v28 = vpop.permute.xlu1 %1021 }
 0x476   : > { %2259 = vst.msk [vmem:[%s3497_s2 + $0x8] sm:$0xff] %vm699_vm3, %v872_v9  ;;  %v875_v10 = vpack.c.bf16 %v872_v9, %v872_v9 }
 0x478   : > { %2417 = vmatmul.mubr.msk.bf16.vlgmr.msra.gmra.mrb[12].mxu1 %vm699_vm3, %v875_v10 }
 0x479   : > { %2427 = vmatpush3.bf16.msra.mxu1 %v979_v11  ;;  %2428 = vmatprep.mubr.msk.bf16.mxu1 %vm3064_vm0, %v3063_v0 }
 0x47a   : > { %2438 = vmatprep.subr.bf16.mxu1 %v3063_v0 }
 0x4d6   : > { %v800_v13 = vpop.f32.mrb[8].mxu1 }
 0x4d7   : > { %v806_v14 = vpack.c.bf16 %v800_v13, %v800_v13  ;;  %v2406_v15 = vpop.f32.mrb[9].mxu1  ;;  %v1300_v13 = vsel %vm762_vm4, %v1295_v12, 0 }
 0x4d8   : > { %v803_v16 = vpop.f32.mrb[10].mxu1 }
 0x4d9   : > { %v2407_v18 = vpop.f32.mrb[11].mxu1  ;;  %2429 = vmatmul.mubr.msk.bf16.vlgmr.msra.gmra.mrb[16].mxu1 %vm699_vm3, %v806_v14 }
 0x4da   : > { %2439 = vmatpush3.bf16.msra.mxu1 %v1091_v17  ;;  %2440 = vmatprep.mubr.msk.bf16.mxu1 %vm3064_vm0, %v3063_v0 }
 0x4db   : > { %2450 = vmatprep.subr.bf16.mxu1 %v3063_v0 }
 0x54b   : > { %v921_v20 = vpop.f32.mrb[12].mxu1 }
 0x54c   : > { %v927_v21 = vpack.c.bf16 %v921_v20, %v921_v20  ;;  %v2418_v22 = vpop.f32.mrb[13].mxu1 }
 0x54d   : > { %v924_v23 = vpop.f32.mrb[14].mxu1 }
 0x54e   : > { %v2419_v27 = vpop.f32.mrb[15].mxu1  ;;  %2423 = vmatmul.mubr.msk.bf16.vlgmr.msra.gmra.mrb[12].mxu0 %vm699_vm3, %v927_v21 }
 0x54f   : > { %2433 = vmatpush3.bf16.xpose.msra.mxu0 %v1029_v25  ;;  %2434 = vmatprep.mubr.msk.bf16.mxu0 %vm3064_vm0, %v3063_v0 }
 0x550   : > { %2444 = vmatprep.subr.bf16.mxu0 %v3063_v0 }
 0x556   : > { %2435 = vmatmul.mubr.msk.bf16.vlgmr.msra.gmra.mrb[16].mxu0 %vm699_vm3, %v1022_v28 }
 0x557   : > { %2446 = vmatprep.mubr.msk.bf16.mxu0 %vm3064_vm0, %v3063_v0  ;;  %2445 = vmatpush3.bf16.msra.mxu0 %v1139_v49 }
 0x558   : > { %2456 = vmatprep.subr.bf16.mxu0 %v3063_v0 }
 0x5ac   : > { %v1015_v29 = vpop.f32.mrb[16].mxu1 }
 0x5ad   : > { %v2430_v30 = vpop.f32.mrb[17].mxu1 }
 0x5ae   : > { %v1018_v31 = vpop.f32.mrb[18].mxu1 }
 0x5af   : > { %v2431_v32 = vpop.f32.mrb[19].mxu1 }
 0x621   : > { %v969_v33 = vpop.f32.mrb[12].mxu0 }
 0x622   : > { %v3528_v34 = vadd.f32 %v1015_v29, %v969_v33  ;;  %v2424_v35 = vpop.f32.mrb[13].mxu0 }
 0x623   : > { %v972_v36 = vpop.f32.mrb[14].mxu0 }
 0x624   : > { %v2425_v37 = vpop.f32.mrb[15].mxu0 }
 0x629   : > { %v1065_v38 = vpop.f32.mrb[16].mxu0 }
 0x62a   : > { %v2436_v39 = vpop.f32.mrb[17].mxu0  ;;  %v1071_v40 = vsel %vm699_vm3, %v1065_v38, -inf }
 0x62b   : > { %1072 = vmax.xlane.f32.xlu1 %v1071_v40  ;;  %v1068_v41 = vpop.f32.mrb[18].mxu0 }
 0x62c   : > { %v2437_v42 = vpop.f32.mrb[19].mxu0 }
 0x63c   : > { %1246 = vrot.lane.b32.xlu1 %v3488_v55, %s3067_s26 }
 0x6b8   : > { %v1073_v43 = vpop.xlane.xlu1 %1072 }
 0x6b9   : > { %v1074_v44 = vsub.f32 %v1065_v38, %v1073_v43 }
 0x6bb   : > { %v1075_v45 = vmul.f32 1.442695, %v1074_v44 }
 0x6bc   : > { %v1247_v58 = vpop.permute.xlu1 %1246 }
 0x6bd   : > { %2698 = vpow2.f32 %v1075_v45  ;;  %v1252_v63 = vsel %vm762_vm4, %v1247_v58, 0  ;;  %v1456_v45 = vld [vmem:[#allocation13 + $0x10] sm:$0xf] }
 0x6c7   : > { %v2699_v46 = vpop.eup %2698 }
 0x6c8   : > { %v1077_v47 = vsel %vm699_vm3, %v2699_v46, 0.0 }
 0x6c9   : > { %1078 = vadd.xlane.f32.xlu0 %v1077_v47 }
 0x6df   : > { %1184 = vrot.lane.b32.xlu0 %v3464_v24, %s3067_s26 }
 0x6e3   : > { %1182 = vrot.lane.b32.xlu0 %v3469_v26, %s3067_s26 }
 0x756   : > { %v1079_v50 = vpop.xlane.xlu0 %1078 }
 0x757   : > { %2700 = vrcp.f32 %v1079_v50 }
 0x75a   : > { %v1185_v53 = vpop.permute.xlu0 %1184 }
 0x75b   : > { %v1190_v56 = vsel %vm699_vm3, %v1185_v53, 0 }
 0x75e   : > { %v1183_v57 = vpop.permute.xlu0 %1182 }
 0x761   : > { %v2701_v51 = vpop.eup %2700 }
 0x762   : > { %v1081_v52 = vmul.f32 %v2701_v51, %v2699_v46  ;;  %v1461_v46 = vsel %vm762_vm4, %v1456_v45, 0 }
 0x764   : > { %2265 = vst.msk [vmem:[%s3497_s2 + $0x10] sm:$0xff] %vm699_vm3, %v1081_v52  ;;  %v1084_v54 = vpack.c.bf16 %v1081_v52, %v1081_v52 }
 0x766   : > { %2441 = vmatmul.mubr.msk.bf16.vlgmr.msra.gmra.mrb[20].mxu1 %vm699_vm3, %v1084_v54 }
 0x767   : > { %2451 = vmatpush3.bf16.xpose.msra.mxu1 %v1190_v56  ;;  %2452 = vmatprep.mubr.msk.bf16.mxu1 %vm3064_vm0, %v3063_v0 }
 0x768   : > { %2462 = vmatprep.subr.bf16.mxu1 %v3063_v0 }
 0x76e   : > { %2453 = vmatmul.mubr.msk.bf16.vlgmr.msra.gmra.mrb[24].mxu1 %vm699_vm3, %v1183_v57 }
 0x76f   : > { %2464 = vmatprep.mubr.msk.bf16.mxu1 %vm3064_vm0, %v3063_v0  ;;  %2463 = vmatpush3.bf16.msra.mxu1 %v1300_v13 }
 0x770   : > { %2474 = vmatprep.subr.bf16.mxu1 %v3063_v0 }
 0x839   : > { %v1127_v59 = vpop.f32.mrb[20].mxu1 }
 0x83a   : > { %v1133_v60 = vpack.c.bf16 %v1127_v59, %v1127_v59  ;;  %v2442_v61 = vpop.f32.mrb[21].mxu1 }
 0x83b   : > { %v1130_v62 = vpop.f32.mrb[22].mxu1 }
 0x83c   : > { %v2443_v1 = vpop.f32.mrb[23].mxu1  ;;  %2447 = vmatmul.mubr.msk.bf16.vlgmr.msra.gmra.mrb[20].mxu0 %vm699_vm3, %v1133_v60 }
 0x83d   : > { %2457 = vmatpush3.bf16.msra.mxu0 %v1252_v63  ;;  %2458 = vmatprep.mubr.msk.bf16.mxu0 %vm3064_vm0, %v3063_v0 }
 0x83e   : > { %2468 = vmatprep.subr.bf16.mxu0 %v3063_v0 }
 0x841   : > { %v1226_v2 = vpop.f32.mrb[24].mxu1 }
 0x842   : > { %v2454_v3 = vpop.f32.mrb[25].mxu1  ;;  %v1232_v4 = vsel %vm699_vm3, %v1226_v2, -inf }
 0x843   : > { %1233 = vmax.xlane.f32.xlu0 %v1232_v4  ;;  %v1229_v5 = vpop.f32.mrb[26].mxu1 }
 0x844   : > { %v2455_v6 = vpop.f32.mrb[27].mxu1 }
 0x859   : > { %1407 = vrot.lane.b32.xlu0 %v3488_v55, %s3068_s16 }
 0x8d0   : > { %v1234_v7 = vpop.xlane.xlu0 %1233 }
 0x8d1   : > { %v1235_v8 = vsub.f32 %v1226_v2, %v1234_v7 }
 0x8d3   : > { %v1236_v9 = vmul.f32 1.442695, %v1235_v8 }
 0x8d4   : > { %v1408_v28 = vpop.permute.xlu0 %1407 }
 0x8d5   : > { %2702 = vpow2.f32 %v1236_v9  ;;  %v1413_v33 = vsel %vm762_vm4, %v1408_v28, 0 }
 0x8df   : > { %v2703_v10 = vpop.eup %2702 }
 0x8e0   : > { %v1238_v11 = vsel %vm699_vm3, %v2703_v10, 0.0 }
 0x8e1   : > { %1239 = vadd.xlane.f32.xlu1 %v1238_v11 }
 0x8f2   : > { %1345 = vrot.lane.b32.xlu1 %v3464_v24, %s3068_s16 }
 0x8f6   : > { %1343 = vrot.lane.b32.xlu1 %v3469_v26, %s3068_s16 }
 0x90f   : > { %v1175_v14 = vpop.f32.mrb[20].mxu0 }
 0x910   : > { %v1181_v15 = vadd.f32 %v1175_v14, %v3528_v34  ;;  %v2448_v16 = vpop.f32.mrb[21].mxu0  ;;  %v1617_v14 = vld [vmem:[#allocation13 + $0x14] sm:$0xf] }
 0x911   : > { %v1178_v17 = vpop.f32.mrb[22].mxu0 }
 0x912   : > { %v2449_v18 = vpop.f32.mrb[23].mxu0 }
 0x96e   : > { %v1240_v19 = vpop.xlane.xlu1 %1239 }
 0x96f   : > { %2704 = vrcp.f32 %v1240_v19 }
 0x972   : > { %v1346_v22 = vpop.permute.xlu1 %1345 }
 0x973   : > { %v1351_v25 = vsel %vm699_vm3, %v1346_v22, 0 }
 0x976   : > { %v1344_v27 = vpop.permute.xlu1 %1343 }
 0x979   : > { %v2705_v20 = vpop.eup %2704 }
 0x97a   : > { %v1242_v21 = vmul.f32 %v2705_v20, %v2703_v10 }
 0x97c   : > { %2269 = vst.msk [vmem:[%s3497_s2 + $0x18] sm:$0xff] %vm699_vm3, %v1242_v21  ;;  %v1245_v23 = vpack.c.bf16 %v1242_v21, %v1242_v21 }
 0x97e   : > { %2459 = vmatmul.mubr.msk.bf16.vlgmr.msra.gmra.mrb[24].mxu0 %vm699_vm3, %v1245_v23 }
 0x97f   : > { %2469 = vmatpush3.bf16.xpose.msra.mxu0 %v1351_v25  ;;  %2470 = vmatprep.mubr.msk.bf16.mxu0 %vm3064_vm0, %v3063_v0 }
 0x980   : > { %2480 = vmatprep.subr.bf16.mxu0 %v3063_v0 }
 0x986   : > { %2471 = vmatmul.mubr.msk.bf16.vlgmr.msra.gmra.mrb[28].mxu0 %vm699_vm3, %v1344_v27 }
 0x987   : > { %2482 = vmatprep.mubr.msk.bf16.mxu0 %vm3064_vm0, %v3063_v0  ;;  %2481 = vmatpush3.bf16.msra.mxu0 %v1461_v46 }
 0x988   : > { %2492 = vmatprep.subr.bf16.mxu0 %v3063_v0 }
 0xa51   : > { %v1288_v29 = vpop.f32.mrb[24].mxu0 }
 0xa52   : > { %v1294_v30 = vpack.c.bf16 %v1288_v29, %v1288_v29  ;;  %v2460_v31 = vpop.f32.mrb[25].mxu0 }
 0xa53   : > { %v1291_v32 = vpop.f32.mrb[26].mxu0 }
 0xa54   : > { %v2461_v34 = vpop.f32.mrb[27].mxu0  ;;  %2465 = vmatmul.mubr.msk.bf16.vlgmr.msra.gmra.mrb[28].mxu1 %vm699_vm3, %v1294_v30 }
 0xa55   : > { %2475 = vmatpush3.bf16.msra.mxu1 %v1413_v33  ;;  %2476 = vmatprep.mubr.msk.bf16.mxu1 %vm3064_vm0, %v3063_v0 }
 0xa56   : > { %2486 = vmatprep.subr.bf16.mxu1 %v3063_v0 }
 0xa59   : > { %v1387_v35 = vpop.f32.mrb[28].mxu0 }
 0xa5a   : > { %v2472_v36 = vpop.f32.mrb[29].mxu0  ;;  %v1393_v37 = vsel %vm699_vm3, %v1387_v35, -inf }
 0xa5b   : > { %1394 = vmax.xlane.f32.xlu1 %v1393_v37  ;;  %v1390_v38 = vpop.f32.mrb[30].mxu0 }
 0xa5c   : > { %v2473_v39 = vpop.f32.mrb[31].mxu0 }
 0xa6c   : > { %1568 = vrot.lane.b32.xlu1 %v3488_v55, %s3069_s7 }
 0xae8   : > { %v1395_v40 = vpop.xlane.xlu1 %1394 }
 0xae9   : > { %v1396_v41 = vsub.f32 %v1387_v35, %v1395_v40 }
 0xaeb   : > { %v1397_v42 = vmul.f32 1.442695, %v1396_v41 }
 0xaec   : > { %v1569_v60 = vpop.permute.xlu1 %1568 }
 0xaed   : > { %2706 = vpow2.f32 %v1397_v42  ;;  %v1574_v2 = vsel %vm762_vm4, %v1569_v60, 0 }
 0xaf7   : > { %v2707_v43 = vpop.eup %2706 }
 0xaf8   : > { %v1399_v44 = vsel %vm699_vm3, %v2707_v43, 0.0 }
 0xaf9   : > { %1400 = vadd.xlane.f32.xlu0 %v1399_v44 }
 0xb0f   : > { %1506 = vrot.lane.b32.xlu0 %v3464_v24, %s3069_s7 }
 0xb13   : > { %1504 = vrot.lane.b32.xlu0 %v3469_v26, %s3069_s7 }
 0xb27   : > { %v1336_v47 = vpop.f32.mrb[28].mxu1 }
 0xb28   : > { %v1342_v48 = vadd.f32 %v1336_v47, %v1181_v15  ;;  %v2466_v49 = vpop.f32.mrb[29].mxu1  ;;  %v1622_v15 = vsel %vm762_vm4, %v1617_v14, 0 }
 0xb29   : > { %v1339_v50 = vpop.f32.mrb[30].mxu1 }
 0xb2a   : > { %v2467_v51 = vpop.f32.mrb[31].mxu1 }
 0xb86   : > { %v1401_v52 = vpop.xlane.xlu0 %1400 }
 0xb87   : > { %2708 = vrcp.f32 %v1401_v52 }
 0xb8a   : > { %v1507_v56 = vpop.permute.xlu0 %1506 }
 0xb8b   : > { %v1512_v58 = vsel %vm699_vm3, %v1507_v56, 0 }
 0xb8e   : > { %v1505_v59 = vpop.permute.xlu0 %1504 }
 0xb91   : > { %v2709_v53 = vpop.eup %2708 }
 0xb92   : > { %v1403_v54 = vmul.f32 %v2709_v53, %v2707_v43 }
 0xb94   : > { %2273 = vst.msk [vmem:[%s3497_s2 + $0x20] sm:$0xff] %vm699_vm3, %v1403_v54  ;;  %v1406_v57 = vpack.c.bf16 %v1403_v54, %v1403_v54 }
 0xb96   : > { %2477 = vmatmul.mubr.msk.bf16.vlgmr.msra.gmra.mrb[32].mxu1 %vm699_vm3, %v1406_v57 }
 0xb97   : > { %2487 = vmatpush3.bf16.xpose.msra.mxu1 %v1512_v58  ;;  %2488 = vmatprep.mubr.msk.bf16.mxu1 %vm3064_vm0, %v3063_v0 }
 0xb98   : > { %2498 = vmatprep.subr.bf16.mxu1 %v3063_v0 }
 0xb9e   : > { %2489 = vmatmul.mubr.msk.bf16.vlgmr.msra.gmra.mrb[36].mxu1 %vm699_vm3, %v1505_v59 }
 0xb9f   : > { %2500 = vmatprep.mubr.msk.bf16.mxu1 %vm3064_vm0, %v3063_v0  ;;  %2499 = vmatpush3.bf16.msra.mxu1 %v1622_v15 }
 0xba0   : > { %2510 = vmatprep.subr.bf16.mxu1 %v3063_v0 }
 0xc69   : > { %v1449_v61 = vpop.f32.mrb[32].mxu1 }
 0xc6a   : > { %v1455_v62 = vpack.c.bf16 %v1449_v61, %v1449_v61  ;;  %v2478_v63 = vpop.f32.mrb[33].mxu1 }
 0xc6b   : > { %v1452_v1 = vpop.f32.mrb[34].mxu1 }
 0xc6c   : > { %v2479_v3 = vpop.f32.mrb[35].mxu1  ;;  %2483 = vmatmul.mubr.msk.bf16.vlgmr.msra.gmra.mrb[32].mxu0 %vm699_vm3, %v1455_v62 }
 0xc6d   : > { %2493 = vmatpush3.bf16.msra.mxu0 %v1574_v2  ;;  %2494 = vmatprep.mubr.msk.bf16.mxu0 %vm3064_vm0, %v3063_v0 }
 0xc6e   : > { %2504 = vmatprep.subr.bf16.mxu0 %v3063_v0 }
 0xc71   : > { %v1548_v4 = vpop.f32.mrb[36].mxu1 }
 0xc72   : > { %v2490_v5 = vpop.f32.mrb[37].mxu1  ;;  %v1554_v6 = vsel %vm699_vm3, %v1548_v4, -inf }
 0xc73   : > { %1555 = vmax.xlane.f32.xlu0 %v1554_v6  ;;  %v1551_v7 = vpop.f32.mrb[38].mxu1 }
 0xc74   : > { %v2491_v8 = vpop.f32.mrb[39].mxu1 }
 0xc89   : > { %1729 = vrot.lane.b32.xlu0 %v3488_v55, %s3070_s6 }
 0xd00   : > { %v1556_v9 = vpop.xlane.xlu0 %1555 }
 0xd01   : > { %v1557_v10 = vsub.f32 %v1548_v4, %v1556_v9 }
 0xd03   : > { %v1558_v11 = vmul.f32 1.442695, %v1557_v10 }
 0xd04   : > { %v1730_v30 = vpop.permute.xlu0 %1729 }
 0xd05   : > { %2710 = vpow2.f32 %v1558_v11  ;;  %v1735_v35 = vsel %vm762_vm4, %v1730_v30, 0 }
 0xd0f   : > { %v2711_v12 = vpop.eup %2710 }
 0xd10   : > { %v1560_v13 = vsel %vm699_vm3, %v2711_v12, 0.0 }
 0xd11   : > { %1561 = vadd.xlane.f32.xlu1 %v1560_v13 }
 0xd22   : > { %1667 = vrot.lane.b32.xlu1 %v3464_v24, %s3070_s6 }
 0xd26   : > { %1665 = vrot.lane.b32.xlu1 %v3469_v26, %s3070_s6 }
 0xd3f   : > { %v1497_v16 = vpop.f32.mrb[32].mxu0 }
 0xd40   : > { %v1503_v17 = vadd.f32 %v1497_v16, %v1342_v48  ;;  %v2484_v18 = vpop.f32.mrb[33].mxu0 }
 0xd41   : > { %v1500_v19 = vpop.f32.mrb[34].mxu0 }
 0xd42   : > { %v2485_v20 = vpop.f32.mrb[35].mxu0 }
 0xd9e   : > { %v1562_v21 = vpop.xlane.xlu1 %1561 }
 0xd9f   : > { %2712 = vrcp.f32 %v1562_v21 }
 0xda2   : > { %v1668_v25 = vpop.permute.xlu1 %1667 }
 0xda3   : > { %v1673_v28 = vsel %vm699_vm3, %v1668_v25, 0 }
 0xda6   : > { %v1666_v29 = vpop.permute.xlu1 %1665 }
 0xda9   : > { %v2713_v22 = vpop.eup %2712 }
 0xdaa   : > { %v1564_v23 = vmul.f32 %v2713_v22, %v2711_v12 }
 0xdac   : > { %2277 = vst.msk [vmem:[%s3497_s2 + $0x28] sm:$0xff] %vm699_vm3, %v1564_v23  ;;  %v1567_v27 = vpack.c.bf16 %v1564_v23, %v1564_v23 }
 0xdae   : > { %2495 = vmatmul.mubr.msk.bf16.vlgmr.msra.gmra.mrb[36].mxu0 %vm699_vm3, %v1567_v27 }
 0xdaf   : > { %2505 = vmatpush3.bf16.xpose.msra.mxu0 %v1673_v28  ;;  %2506 = vmatprep.mubr.msk.bf16.mxu0 %vm3064_vm0, %v3063_v0 }
 0xdb0   : > { %2516 = vmatprep.subr.bf16.mxu0 %v3063_v0 }
 0xdb6   : > { %2507 = vmatmul.mubr.msk.bf16.vlgmr.msra.gmra.mrb[40].mxu0 %vm699_vm3, %v1666_v29 }
 0xdb7   : > { %2518 = vmatprep.mubr.msk.bf16.mxu0 %vm3064_vm0, %v3063_v0 }
 0xe81   : > { %v1610_v31 = vpop.f32.mrb[36].mxu0 }
 0xe82   : > { %v1616_v32 = vpack.c.bf16 %v1610_v31, %v1610_v31  ;;  %v2496_v33 = vpop.f32.mrb[37].mxu0 }
 0xe83   : > { %v1613_v34 = vpop.f32.mrb[38].mxu0 }
 0xe84   : > { %v2497_v36 = vpop.f32.mrb[39].mxu0  ;;  %2501 = vmatmul.mubr.msk.bf16.vlgmr.msra.gmra.mrb[40].mxu1 %vm699_vm3, %v1616_v32 }
 0xe85   : > { %2511 = vmatpush3.bf16.msra.mxu1 %v1735_v35  ;;  %2512 = vmatprep.mubr.msk.bf16.mxu1 %vm3064_vm0, %v3063_v0 }
 0xe86   : > { %2522 = vmatprep.subr.bf16.mxu1 %v3063_v0 }
 0xe89   : > { %v1709_v37 = vpop.f32.mrb[40].mxu0 }
 0xe8a   : > { %v2508_v38 = vpop.f32.mrb[41].mxu0  ;;  %v1715_v39 = vsel %vm699_vm3, %v1709_v37, -inf }
 0xe8b   : > { %1716 = vmax.xlane.f32.xlu1 %v1715_v39  ;;  %v1712_v40 = vpop.f32.mrb[42].mxu0 }
 0xe8c   : > { %v2509_v41 = vpop.f32.mrb[43].mxu0 }
 0xf18   : > { %v1717_v42 = vpop.xlane.xlu1 %1716 }
 0xf19   : > { %v1718_v43 = vsub.f32 %v1709_v37, %v1717_v42 }
 0xf1b   : > { %v1719_v44 = vmul.f32 1.442695, %v1718_v43 }
 0xf1d   : > { %2714 = vpow2.f32 %v1719_v44 }
 0xf27   : > { %v2715_v45 = vpop.eup %2714 }
 0xf28   : > { %v1721_v46 = vsel %vm699_vm3, %v2715_v45, 0.0 }
 0xf29   : > { %1722 = vadd.xlane.f32.xlu0 %v1721_v46 }
 0xf3f   : > { %1828 = vrot.lane.b32.xlu0 %v3464_v24, %s3071_s3 }
 0xf43   : > { %1826 = vrot.lane.b32.xlu0 %v3469_v26, %s3071_s3  ;;  %v1778_v26 = vld [vmem:[#allocation13 + $0x18] sm:$0xf] }
 0xf44   : > { %v1783_v59 = vsel %vm762_vm4, %v1778_v26, 0 }
 0xf45   : > { %2517 = vmatpush3.bf16.msra.mxu0 %v1783_v59 }
 0xf46   : > { %2528 = vmatprep.subr.bf16.mxu0 %v3063_v0 }
 0xf57   : > { %v1658_v47 = vpop.f32.mrb[40].mxu1 }
 0xf58   : > { %v1664_v48 = vadd.f32 %v1658_v47, %v1503_v17  ;;  %v2502_v49 = vpop.f32.mrb[41].mxu1 }
 0xf59   : > { %v1661_v50 = vpop.f32.mrb[42].mxu1 }
 0xf5a   : > { %v2503_v51 = vpop.f32.mrb[43].mxu1 }
 0xfb6   : > { %v1723_v52 = vpop.xlane.xlu0 %1722 }
 0xfb7   : > { %2716 = vrcp.f32 %v1723_v52 }
 0xfba   : > { %v1829_v56 = vpop.permute.xlu0 %1828 }
 0xfbb   : > { %v1834_v58 = vsel %vm699_vm3, %v1829_v56, 0 }
 0xfbe   : > { %v1827_v24 = vpop.permute.xlu0 %1826 }
 0xfc1   : > { %v2717_v53 = vpop.eup %2716 }
 0xfc2   : > { %v1725_v54 = vmul.f32 %v2717_v53, %v2715_v45 }
 0xfc4   : > { %2281 = vst.msk [vmem:[%s3497_s2 + $0x30] sm:$0xff] %vm699_vm3, %v1725_v54  ;;  %v1728_v57 = vpack.c.bf16 %v1725_v54, %v1725_v54 }
 0xfc6   : > { %2513 = vmatmul.mubr.msk.bf16.vlgmr.msra.gmra.mrb[44].mxu1 %vm699_vm3, %v1728_v57 }
 0xfc7   : > { %2523 = vmatpush3.bf16.xpose.msra.mxu1 %v1834_v58  ;;  %2524 = vmatprep.mubr.msk.bf16.mxu1 %vm3064_vm0, %v3063_v0 }
 0xfc8   : > { %2534 = vmatprep.subr.bf16.mxu1 %v3063_v0 }
 0xfce   : > { %2525 = vmatmul.mubr.msk.bf16.vlgmr.msra.gmra.mrb[48].mxu1 %vm699_vm3, %v1827_v24 }
 0xfcf   : > { %2536 = vmatprep.mubr.msk.bf16.mxu1 %vm3064_vm0, %v3063_v0 }
0x1099   : > { %v1771_v60 = vpop.f32.mrb[44].mxu1 }
0x109a   : > { %v1777_v61 = vpack.c.bf16 %v1771_v60, %v1771_v60  ;;  %v2514_v62 = vpop.f32.mrb[45].mxu1 }
0x109b   : > { %v1774_v63 = vpop.f32.mrb[46].mxu1 }
0x109c   : > { %v2515_v1 = vpop.f32.mrb[47].mxu1  ;;  %2519 = vmatmul.mubr.msk.bf16.vlgmr.msra.gmra.mrb[44].mxu0 %vm699_vm3, %v1777_v61 }
0x109d   : > { %2530 = vmatprep.mubr.msk.bf16.mxu0 %vm3064_vm0, %v3063_v0  ;;  %v1939_v0 = vld [vmem:[#allocation13 + $0x1c] sm:$0xf] }
0x109e   : > { %v1944_v12 = vsel %vm762_vm4, %v1939_v0, 0 }
0x109f   : > { %2535 = vmatpush3.bf16.msra.mxu1 %v1944_v12 }
0x10a1   : > { %v1870_v2 = vpop.f32.mrb[48].mxu1 }
0x10a2   : > { %v2526_v3 = vpop.f32.mrb[49].mxu1  ;;  %v1876_v4 = vsel %vm699_vm3, %v1870_v2, -inf }
0x10a3   : > { %1877 = vmax.xlane.f32.xlu0 %v1876_v4  ;;  %v1873_v5 = vpop.f32.mrb[50].mxu1 }
0x10a4   : > { %v2527_v6 = vpop.f32.mrb[51].mxu1 }
0x1130   : > { %v1878_v7 = vpop.xlane.xlu0 %1877 }
0x1131   : > { %v1879_v8 = vsub.f32 %v1870_v2, %v1878_v7 }
0x1133   : > { %v1880_v9 = vmul.f32 1.442695, %v1879_v8 }
0x1135   : > { %2718 = vpow2.f32 %v1880_v9 }
0x113f   : > { %v2719_v10 = vpop.eup %2718 }
0x1140   : > { %v1882_v11 = vsel %vm699_vm3, %v2719_v10, 0.0 }
0x1141   : > { %1883 = vadd.xlane.f32.xlu1 %v1882_v11 }
0x1152   : > { %1890 = vrot.lane.b32.xlu1 %v3488_v55, %s3071_s3 }
0x116f   : > { %v1819_v13 = vpop.f32.mrb[44].mxu0 }
0x1170   : > { %v1825_v14 = vadd.f32 %v1819_v13, %v1664_v48  ;;  %v2520_v15 = vpop.f32.mrb[45].mxu0 }
0x1171   : > { %v1822_v16 = vpop.f32.mrb[46].mxu0 }
0x1172   : > { %v2521_v17 = vpop.f32.mrb[47].mxu0 }
0x11ce   : > { %v1884_v18 = vpop.xlane.xlu1 %1883 }
0x11cf   : > { %2720 = vrcp.f32 %v1884_v18 }
0x11d2   : > { %v1891_v19 = vpop.permute.xlu1 %1890 }
0x11d3   : > { %v1896_v20 = vsel %vm762_vm4, %v1891_v19, 0 }
0x11d4   : > { %2529 = vmatpush3.bf16.msra.mxu0 %v1896_v20 }
0x11d9   : > { %v2721_v55 = vpop.eup %2720 }
0x11da   : > { %v1886_v21 = vmul.f32 %v2721_v55, %v2719_v10 }
0x11dc   : > { %2285 = vst.msk [vmem:[%s3497_s2 + $0x38] sm:$0xff] %vm699_vm3, %v1886_v21  ;;  %v1889_v22 = vpack.c.bf16 %v1886_v21, %v1886_v21 }
0x11de   : > { %2531 = vmatmul.mubr.msk.bf16.vlgmr.msra.gmra.mrb[48].mxu0 %vm699_vm3, %v1889_v22 }
0x12b1   : > { %v1932_v23 = vpop.f32.mrb[48].mxu0 }
0x12b2   : > { %v1938_v25 = vpack.c.bf16 %v1932_v23, %v1932_v23  ;;  %v2532_v27 = vpop.f32.mrb[49].mxu0 }
0x12b3   : > { %v1935_v28 = vpop.f32.mrb[50].mxu0 }
0x12b4   : > { %v2533_v29 = vpop.f32.mrb[51].mxu0  ;;  %2537 = vmatmul.mubr.msk.bf16.vlgmr.msra.gmra.mrb[52].mxu1 %vm699_vm3, %v1938_v25 }
0x12b5   : > { %2935 = shalt.err (!%p2932_p6)
}
0x12b6   : > { %s2936_s2 = scalar_lea.hbm %s3655_s12, 1024  ;;  %s2940_s7 = scalar_lea.hbm %s3782_s15, 2048 }
0x12b7   : > { %p2937_p10 = scmp.ne.s32.totalorder %s3655_s12, %s2936_s2  ;;  %p2941_p8 = scmp.lt.u32.totalorder %s3655_s12, %s3782_s15 }
0x12b8   : > { %p2942_p3 = scmp.lt.u32.totalorder %s2940_s7, %s2936_s2  ;;  %p2944_p13 = scmp.lt.u32.totalorder %s2936_s2, %s3655_s12 }
0x12b9   : > { %p2938_p1 = pnand %p2937_p10, %p3783_p0 }
0x12ba   : > { %p2943_p12 = por %p2942_p3, %p2941_p8 }
0x12bb   : > { %p2939_p9 = pneg %p2938_p1 }
0x12bc   : > { %p2945_p7 = por %p2944_p13, %p2943_p12 }
0x12be   : > { %p2946_p5 = pnand %p2945_p7, %p2939_p9 }
0x12c0   : > { %2949 = shalt.err (!%p2946_p5)
}
0x12c1   : > { %s3073_s13 = smov 128   ;;  %s3074_s21 = smov 8   ;;  %v2288_v31 = vld [vmem:[#allocation15] ss:$0 sm:$0xff] }
0x12c2   : > { %2565 = dma.vmem_to_hbm [thread:$0]  (%p3783_p0), %s3657_s18, 1024, %s3655_s12, %s2002_s25, %s3073_s13, %s3073_s13, %s3074_s21  }
0x12c3   : > { %s2291_s20 = sshll.u32 %s3044_s30, 7  ;;  %s450_s14 = scalar_lea.vmem [#allocation16], %s3407_s4 }
0x12c4   : > { %s2016_s11 = sshll.u32 %s450_s14, 4  ;;  %s3784_s2 = sld [smem:[#allocation31_spill]]  ;;  %s3690_s11 = int_to_ptr.vmem [resolvable:$true] %s2016_s11 }
0x12c5   : > { %s1997_s30 = scalar_lea.sflag [#allocation6], %s3404_s17  ;;  %s2950_s4 = scalar_lea.vmem %s3690_s11, 128 }
0x12c6   : > { %p2951_p2 = scmp.ne.s32.totalorder %s3690_s11, %s2950_s4  ;;  %s3075_s18 = smov [#allocation16]  }
0x12c7   : > { %s2954_s12 = sshll.u32 %s3075_s18, 4  ;;  %s2955_s12 = int_to_ptr.vmem [resolvable:$false] %s2954_s12 }
0x12c8   : > { %p2952_p4 = pnand %p2951_p2, %p3783_p0  ;;  %s2956_s25 = scalar_lea.vmem %s2955_s12, 256 }
0x12c9   : > { %p2957_p6 = scmp.lt.s32.totalorder %s3690_s11, %s2955_s12  ;;  %p2958_p10 = scmp.lt.s32.totalorder %s2956_s25, %s2950_s4 }
0x12ca   : > { %s3688_s26 = scalar_lea.hbm %s3784_s2, %s2291_s20  ;;  %p2953_p11 = pneg %p2952_p4 }
0x12cb   : > { %p2959_p1 = por %p2958_p10, %p2957_p6 }
0x12cd   : > { %p2960_p9 = pnand %p2959_p1, %p2953_p11 }
0x1387   : > { %v1980_v30 = vpop.f32.mrb[52].mxu1 }
0x1388   : > { %v1986_v32 = vadd.f32 %v1980_v30, %v1825_v14  ;;  %v2538_v33 = vpop.f32.mrb[53].mxu1 }
0x1389   : > { %v1983_v34 = vpop.f32.mrb[54].mxu1 }
0x138a   : > { %v1994_v35 = vadd.f32 %v2288_v31, %v1986_v32  ;;  %v2539_v36 = vpop.f32.mrb[55].mxu1 }
0x138c   : > { %1995 = vst.msk [vmem:[%s450_s14] sm:$0xff] %vm497_vm1, %v1994_v35 }
0x138d   : > { %2963 = shalt.err (!%p2960_p9)
}
0x138e   : > { %s2964_s17 = scalar_lea.hbm %s3688_s26, 128  ;;  %s2968_s6 = scalar_lea.hbm %s3784_s2, 256 }
0x138f   : > { %p2965_p8 = scmp.ne.s32.totalorder %s3688_s26, %s2964_s17  ;;  %p2969_p13 = scmp.lt.u32.totalorder %s3688_s26, %s3784_s2 }
0x1390   : > { %p2970_p7 = scmp.lt.u32.totalorder %s2968_s6, %s2964_s17  ;;  %p2972_p2 = scmp.lt.u32.totalorder %s2964_s17, %s3688_s26 }
0x1391   : > { %p2966_p3 = pnand %p2965_p8, %p3783_p0 }
0x1392   : > { %p2971_p5 = por %p2970_p7, %p2969_p13 }
0x1393   : > { %p2967_p12 = pneg %p2966_p3 }
0x1394   : > { %p2973_p4 = por %p2972_p2, %p2971_p5 }
0x1396   : > { %p2974_p11 = pnand %p2973_p4, %p2967_p12 }
0x1398   : > { %2977 = shalt.err (!%p2974_p11)
}
0x1399   : > { %2564 = dma.vmem_to_hbm [thread:$0]  (%p3783_p0), %s3690_s11, 128, %s3688_s26, %s1997_s30  }
0x139a PF: > { %s2045_s21 = sand.u32 1, %s3032_s27   ;;  %p3785_p6 = scmp.ne.s32.totalorder %s3772_s24, 0 }
0x139b   : > { %p3786_p10 = scmp.ge.s32.totalorder %s3052_s10, 2  ;;  %s2046_s20 = scalar_lea.sflag [#allocation6], %s2045_s21 }
0x139d   : > { %p2592_p1 = pnand %p3786_p10, %p3785_p6 }
0x139f   : > { %3023 = dma.done.wait (!%p2592_p1), %s2046_s20, 128  }
0x13a0   : > { %3025 = vsyncadd (!%p2592_p1), %s2046_s20, 4294967168  ;;  %s2055_s14 = scalar_lea.sflag [#allocation18], %s2045_s21 }
0x13a1   : > { %3027 = dma.done.wait (!%p2592_p1), %s2055_s14, 1024  }
0x13a2   : > { %3029 = vsyncadd (!%p2592_p1), %s2055_s14, 4294966272  ;;  %s33_s10 = sadd.s32 1, %s3052_s10   ;;  %s3787_s27 = smov %s3036_s28 }
0x13a3   : > { %p30_p9 = scmp.ge.s32.totalorder %s33_s10, 4   ;;  %s3788_s28 = smov %s3040_s29 }
0x13a4   : > { %s3789_s29 = smov %s3324_s22  ;;  %s3790_s30 = smov %s3048_s9 }
0x13a5   : > { %s3791_s9 = smov %s3793_s19  ;;  %32 = sbr.rel (!%p30_p9) target bundleno = 20 (0x14), region = 154 }
0x13ac   :  { %2060 = vsyncpa [#allocation5], 1 }
0x13ad   :  { %2062 = vsyncpa [#allocation5 + $0x1], 1 }
0x13ae   :  { %2063 = vsyncpa [#allocation8], 1 }
0x13af   :  { %2065 = vsyncpa [#allocation8 + $0x1], 1 }
0x13b0   :  { %2066 = vsyncpa [#allocation11], 1 }
0x13b1   :  { %2067 = vsyncpa [#allocation14], 1 }
0x13b2   :  { %2068 = vsyncpa [#allocation6], 1 }
0x13b3   :  { %2070 = vsyncpa [#allocation6 + $0x1], 1 }
0x13b4   :  { %2071 = vsyncpa [#allocation18], 1 }
0x13b5   :  { %2073 = vsyncpa [#allocation18 + $0x1], 1 }

</bundles_post_ra>
